<compile_context>
chip_gen: v6e
topology: v6e:2x2x1
jax: 0.10.0
libtpu: 0.0.40
codegen_flags: <defaults>
</compile_context>

<pallas_src>
import functools

import jax
import jax.numpy as jnp
from jax.experimental import pallas as pl
from jax.experimental.pallas import tpu as pltpu


def _painn_kernel(idx_i_sm, idx_j_sm,
                  q_ref, mu_ref, w_ref,
                  w1t_ref, b1_ref, w2t_ref, b2_ref,
                  wmixt_ref, bmix_ref,
                  w3tq_ref, w3tv_ref, b3_ref, w4t_ref, b4_ref,
                  out_ref,
                  src_ref, acc_ref, gath_ref, contrib_ref,
                  *, n_atom_basis, n_atoms, pair_tile, epsilon):
    F = n_atom_basis
    A = n_atoms
    TP = pair_tile
    f32 = jnp.float32
    t = pl.program_id(0)

    # ---- one-time init (first pair tile): interatomic context net + accumulator ----
    @pl.when(t == 0)
    def _init():
        q = q_ref[...]                       # [A, F]
        mu = mu_ref[...]                     # [A, 3F]
        h = jax.nn.silu(jnp.dot(q, w1t_ref[...], preferred_element_type=f32)
                        + b1_ref[...])
        x = jnp.dot(h, w2t_ref[...], preferred_element_type=f32) + b2_ref[...]   # [A, 3F]
        src_ref[:, :3 * F] = x               # gather source: x || mu
        src_ref[:, 3 * F:] = mu
        acc_ref[:, :F] = q                   # accumulator: q || mu (scatter_add target)
        acc_ref[:, F:] = mu

    base = t * TP

    # ---- gather: O(TP) dynamic row copies (replaces the O(TP*A) one-hot matmul) ----
    @pl.loop(0, TP)
    def _gather(p):
        j = idx_j_sm[base + p]
        j = jnp.clip(j, 0, A - 1)            # keep padded/invalid indices in-bounds
        gath_ref[pl.ds(p, 1), :] = src_ref[pl.ds(j, 1), :]

    # ---- vectorized per-pair message on the gathered tile ----
    gath = gath_ref[...]                     # [TP, 6F] = xj || muj
    xj = gath[:, :3 * F]
    muj = gath[:, 3 * F:]
    w = w_ref[...]                           # [TP, 5F] = Wq | Wdir_x | Wdir_y | Wdir_z | Wmu

    dq_pair = w[:, :F] * xj[:, :F]                                   # [TP, F]
    dmumu = w[:, 4 * F:] * xj[:, 2 * F:]                             # [TP, F]
    xjR = xj[:, F:2 * F]                                             # [TP, F]
    dmu_x = w[:, F:2 * F] * xjR + dmumu * muj[:, :F]
    dmu_y = w[:, 2 * F:3 * F] * xjR + dmumu * muj[:, F:2 * F]
    dmu_z = w[:, 3 * F:4 * F] * xjR + dmumu * muj[:, 2 * F:]
    contrib_ref[...] = jnp.concatenate([dq_pair, dmu_x, dmu_y, dmu_z], axis=-1)  # [TP, 4F]

    # ---- scatter_add: O(TP) dynamic row RMWs (replaces the O(TP*A) one-hot matmul) ----
    @pl.loop(0, TP)
    def _scatter(p):
        i = idx_i_sm[base + p]

        @pl.when(jnp.logical_and(i >= 0, i < A))   # padded pairs (idx outside [0,A)) dropped
        def _():
            acc_ref[pl.ds(i, 1), :] = (acc_ref[pl.ds(i, 1), :]
                                       + contrib_ref[pl.ds(p, 1), :])

    # ---- finalize on last pair tile: channel mix + intraatomic context net ----
    @pl.when(t == pl.num_programs(0) - 1)
    def _finalize():
        q_new = acc_ref[:, :F]                               # [A, F]
        mu_x = acc_ref[:, F:2 * F]
        mu_y = acc_ref[:, 2 * F:3 * F]
        mu_z = acc_ref[:, 3 * F:]

        wmixt = wmixt_ref[...]
        bmix = bmix_ref[...]
        mix_x = jnp.dot(mu_x, wmixt, preferred_element_type=f32) + bmix   # [A, 2F]
        mix_y = jnp.dot(mu_y, wmixt, preferred_element_type=f32) + bmix
        mix_z = jnp.dot(mu_z, wmixt, preferred_element_type=f32) + bmix
        V0, W0 = mix_x[:, :F], mix_x[:, F:]
        V1, W1 = mix_y[:, :F], mix_y[:, F:]
        V2, W2 = mix_z[:, :F], mix_z[:, F:]

        mu_Vn = jnp.sqrt(V0 * V0 + V1 * V1 + V2 * V2 + epsilon)          # [A, F]
        vw_sum = V0 * W0 + V1 * W1 + V2 * W2                             # [A, F]

        # intraatomic net without in-kernel ctx concat: Dense(2F->F) weight pre-split.
        h2 = jax.nn.silu(
            jnp.dot(q_new, w3tq_ref[...], preferred_element_type=f32)
            + jnp.dot(mu_Vn, w3tv_ref[...], preferred_element_type=f32)
            + b3_ref[...])
        x2 = jnp.dot(h2, w4t_ref[...], preferred_element_type=f32) + b4_ref[...]  # [A, 3F]
        dq_intra = x2[:, :F]
        dmu_intra = x2[:, F:2 * F]
        dqmu_intra = x2[:, 2 * F:]

        # lane-dense [A, 4F] output slab: q_out || mu_out_x || mu_out_y || mu_out_z
        out_ref[...] = jnp.concatenate(
            [dq_intra + dqmu_intra * vw_sum,
             dmu_intra * W0, dmu_intra * W1, dmu_intra * W2], axis=-1)


def _choose_pair_tile(n_pairs, target=512):
    """Largest multiple-of-8 divisor of n_pairs <= target (or n_pairs itself)."""
    if n_pairs <= target or n_pairs % 8 != 0:
        return n_pairs
    tp = target - (target % 8)
    while tp >= 8:
        if n_pairs % tp == 0:
            return tp
        tp -= 8
    return n_pairs


def painn_interaction_pallas(q, mu, Wij, dir_ij, idx_i, idx_j, n_atoms, params,
                             epsilon=1e-8, pair_tile=None, sort_pairs=False):
    F = q.shape[-1]
    A = int(n_atoms)
    P = int(idx_i.shape[0])
    f32 = jnp.float32

    TP = pair_tile if pair_tile is not None else _choose_pair_tile(P)
    assert P % TP == 0, "pair_tile must divide the number of pairs"

    idx_i2 = jnp.asarray(idx_i).reshape(P).astype(jnp.int32)
    idx_j2 = jnp.asarray(idx_j).reshape(P).astype(jnp.int32)
    wij2 = Wij.reshape(P, 3 * F).astype(f32)
    dir2 = dir_ij.reshape(P, 3).astype(f32)

    if sort_pairs:
        # improves scatter locality (contiguous idx_i per tile); wrapper-side, free in XLA
        order = jnp.argsort(idx_i2)
        idx_i2, idx_j2 = idx_i2[order], idx_j2[order]
        wij2, dir2 = wij2[order], dir2[order]

    # fold dir_ij into the filter: stream [P, 5F] = Wq | WR*dir_x | WR*dir_y | WR*dir_z | Wmu
    Wq, WR, Wmu = wij2[:, :F], wij2[:, F:2 * F], wij2[:, 2 * F:]
    wcomb = jnp.concatenate(
        [Wq, WR * dir2[:, 0:1], WR * dir2[:, 1:2], WR * dir2[:, 2:3], Wmu], axis=-1)

    q2 = q.reshape(A, F).astype(f32)
    mu2 = mu.reshape(A, 3 * F).astype(f32)

    # pre-transposed weights (PyTorch Linear: y = x @ W.T + b)
    w1t = params["w1"].T.astype(f32)
    b1 = params["b1"].reshape(1, -1).astype(f32)
    w2t = params["w2"].T.astype(f32)
    b2 = params["b2"].reshape(1, -1).astype(f32)
    wmixt = params["wmix"].T.astype(f32)
    bmix = params["bmix"].reshape(1, -1).astype(f32)
    w3t = params["w3"].T.astype(f32)          # [2F, F]
    w3tq, w3tv = w3t[:F], w3t[F:]             # split -> no in-kernel ctx concat
    b3 = params["b3"].reshape(1, -1).astype(f32)
    w4t = params["w4"].T.astype(f32)
    b4 = params["b4"].reshape(1, -1).astype(f32)

    weights = (w1t, b1, w2t, b2, wmixt, bmix, w3tq, w3tv, b3, w4t, b4)
    n_weight_elems = sum(int(wgt.size) for wgt in weights)

    def _pair_spec(last):
        return pl.BlockSpec((TP, last), lambda t, ii, jj: (t, 0))

    def _const_spec(arr):
        return pl.BlockSpec(arr.shape, lambda t, ii, jj: (0, 0))

    in_specs = [
        _const_spec(q2), _const_spec(mu2),     # atoms: VMEM-resident across the pair grid
        _pair_spec(5 * F),                     # fused filter: streamed per pair tile
    ] + [_const_spec(wgt) for wgt in weights]

    # scoped-VMEM budget from the actual resident footprint (+50% and 8 MiB headroom)
    resident_elems = (2 * (A * F + A * 3 * F)            # q, mu (double-buffered consts)
                      + 2 * n_weight_elems               # weights (double-buffered consts)
                      + 2 * 2 * TP * 5 * F               # streamed filter (double-buffered)
                      + A * 6 * F + A * 4 * F            # src / acc scratch
                      + TP * 6 * F + TP * 4 * F          # gather / contrib scratch
                      + 2 * A * 4 * F)                   # output slab
    vmem_limit = int(min(max(resident_elems * 4 * 1.5 + (8 << 20), 32 << 20), 100 << 20))

    cost = pl.CostEstimate(
        flops=int(2 * A * F * (F + 3 * F)                # interatomic context net
                  + 2 * 3 * A * F * 2 * F                # channel mix (3 components)
                  + 2 * A * F * (2 * F + 3 * F)          # intraatomic context net
                  + 14 * P * F),                         # per-pair message math
        transcendentals=int(3 * A * F),                  # 2x silu + sqrt
        bytes_accessed=int(4 * (A * 4 * F + A * 4 * F + P * 5 * F + n_weight_elems) + 8 * P),
    )

    kernel = functools.partial(
        _painn_kernel,
        n_atom_basis=F, n_atoms=A, pair_tile=TP, epsilon=epsilon)

    out = pl.pallas_call(
        kernel,
        out_shape=jax.ShapeDtypeStruct((A, 4 * F), f32),
        grid_spec=pltpu.PrefetchScalarGridSpec(
            num_scalar_prefetch=2,                       # idx_i, idx_j -> SMEM
            grid=(P // TP,),                             # reduction over pair tiles
            in_specs=in_specs,
            out_specs=pl.BlockSpec((A, 4 * F), lambda t, ii, jj: (0, 0)),
            scratch_shapes=[
                pltpu.VMEM((A, 6 * F), f32),             # src = [x || mu] gather source
                pltpu.VMEM((A, 4 * F), f32),             # acc = [q+dq || mu+dmu]
                pltpu.VMEM((TP, 6 * F), f32),            # gathered rows for this tile
                pltpu.VMEM((TP, 4 * F), f32),            # per-pair contributions
            ]),
        compiler_params=pltpu.CompilerParams(
            dimension_semantics=("arbitrary",),
            vmem_limit_bytes=vmem_limit),
        cost_estimate=cost,
    )(idx_i2, idx_j2, q2, mu2, wcomb, *weights)

    q_out = out[:, :F].reshape(A, 1, F)
    mu_out = out[:, F:].reshape(A, 3, F)
    return q_out, mu_out


def painn_interaction_reference(q, mu, Wij, dir_ij, idx_i, idx_j, n_atoms, params,
                                epsilon=1e-8):
    """Pure-JAX reference mirroring the PyTorch forward."""
    def dense(x, w, b):
        return x @ w.T + b

    x = dense(jax.nn.silu(dense(q, params["w1"], params["b1"])),
              params["w2"], params["b2"])
    xj = x[idx_j]
    muj = mu[idx_j]
    xw = Wij * xj
    dq, dmuR, dmumu = jnp.split(xw, 3, axis=-1)
    dq = jnp.zeros((n_atoms,) + dq.shape[1:], jnp.float32).at[idx_i].add(dq)
    dmu = dmuR * dir_ij[..., None] + dmumu * muj
    dmu = jnp.zeros((n_atoms,) + dmu.shape[1:], jnp.float32).at[idx_i].add(dmu)
    q = q + dq
    mu = mu + dmu
    mu_mix = dense(mu, params["wmix"], params["bmix"])
    mu_V, mu_W = jnp.split(mu_mix, 2, axis=-1)
    mu_Vn = jnp.sqrt(jnp.sum(mu_V ** 2, axis=-2, keepdims=True) + epsilon)
    ctx = jnp.concatenate([q, mu_Vn], axis=-1)
    x = dense(jax.nn.silu(dense(ctx, params["w3"], params["b3"])),
              params["w4"], params["b4"])
    dq_intra, dmu_intra, dqmu_intra = jnp.split(x, 3, axis=-1)
    dmu_intra = dmu_intra * mu_W
    dqmu_intra = dqmu_intra * jnp.sum(mu_V * mu_W, axis=1, keepdims=True)
    return dq_intra + dqmu_intra, dmu_intra


if __name__ == "__main__":
    F = 32          # n_atom_basis
    n_atoms = 8
    n_pairs = 16

    key = jax.random.PRNGKey(0)
    ks = jax.random.split(key, 16)

    # deterministic synthetic parameters (PyTorch Linear layout: [out, in])
    s = 0.1
    params = {
        "w1": s * jax.random.normal(ks[0], (F, F), jnp.float32),
        "b1": s * jax.random.normal(ks[1], (F,), jnp.float32),
        "w2": s * jax.random.normal(ks[2], (3 * F, F), jnp.float32),
        "b2": s * jax.random.normal(ks[3], (3 * F,), jnp.float32),
        "wmix": s * jax.random.normal(ks[4], (2 * F, F), jnp.float32),
        "bmix": s * jax.random.normal(ks[5], (2 * F,), jnp.float32),
        "w3": s * jax.random.normal(ks[6], (F, 2 * F), jnp.float32),
        "b3": s * jax.random.normal(ks[7], (F,), jnp.float32),
        "w4": s * jax.random.normal(ks[8], (3 * F, F), jnp.float32),
        "b4": s * jax.random.normal(ks[9], (3 * F,), jnp.float32),
    }

    # inputs
    q = jax.random.normal(ks[10], (n_atoms, 1, F), jnp.float32)
    mu = jax.random.normal(ks[11], (n_atoms, 3, F), jnp.float32)
    Wij = jax.random.normal(ks[12], (n_pairs, 1, 3 * F), jnp.float32)
    dir_raw = jax.random.normal(ks[13], (n_pairs, 3), jnp.float32)
    dir_ij = dir_raw / jnp.linalg.norm(dir_raw, axis=-1, keepdims=True)
    idx_i = jax.random.randint(ks[14], (n_pairs,), 0, n_atoms, jnp.int32)
    idx_j = jax.random.randint(ks[15], (n_pairs,), 0, n_atoms, jnp.int32)

    q_exp, mu_exp = painn_interaction_reference(
        q, mu, Wij, dir_ij, idx_i, idx_j, n_atoms, params)

    # --- pair_tile=8 -> 2 grid steps exercise the accumulator / init / finalize gating ---
    q_out, mu_out = painn_interaction_pallas(
        q, mu, Wij, dir_ij, idx_i, idx_j, n_atoms, params, pair_tile=8)
    jax.block_until_ready((q_out, mu_out))

    assert q_out.shape == (n_atoms, 1, F) and mu_out.shape == (n_atoms, 3, F)
    assert jnp.allclose(q_out, q_exp, atol=1e-4, rtol=1e-4)
    assert jnp.allclose(mu_out, mu_exp, atol=1e-4, rtol=1e-4)

    # --- sorted-pair path (wrapper pre-sort by idx_i for scatter locality) ---
    q_s, mu_s = painn_interaction_pallas(
        q, mu, Wij, dir_ij, idx_i, idx_j, n_atoms, params,
        pair_tile=8, sort_pairs=True)
    jax.block_until_ready((q_s, mu_s))
    assert jnp.allclose(q_s, q_exp, atol=1e-4, rtol=1e-4)
    assert jnp.allclose(mu_s, mu_exp, atol=1e-4, rtol=1e-4)

    print("KERNEL_OK")
</pallas_src>

<mosaic_0001>
module attributes {stable_mosaic.version = 11 : i64} {
  func.func @_painn_kernel(%arg0: i32, %arg1: memref<16xi32, #tpu.memory_space<smem>>, %arg2: memref<16xi32, #tpu.memory_space<smem>>, %arg3: memref<8x32xf32, #tpu.memory_space<vmem>>, %arg4: memref<8x96xf32, #tpu.memory_space<vmem>>, %arg5: memref<8x160xf32, #tpu.memory_space<vmem>>, %arg6: memref<32x32xf32, #tpu.memory_space<vmem>>, %arg7: memref<1x32xf32, #tpu.memory_space<vmem>>, %arg8: memref<32x96xf32, #tpu.memory_space<vmem>>, %arg9: memref<1x96xf32, #tpu.memory_space<vmem>>, %arg10: memref<32x64xf32, #tpu.memory_space<vmem>>, %arg11: memref<1x64xf32, #tpu.memory_space<vmem>>, %arg12: memref<32x32xf32, #tpu.memory_space<vmem>>, %arg13: memref<32x32xf32, #tpu.memory_space<vmem>>, %arg14: memref<1x32xf32, #tpu.memory_space<vmem>>, %arg15: memref<32x96xf32, #tpu.memory_space<vmem>>, %arg16: memref<1x96xf32, #tpu.memory_space<vmem>>, %arg17: memref<8x128xf32, #tpu.memory_space<vmem>>, %arg18: memref<8x192xf32, #tpu.memory_space<vmem>>, %arg19: memref<8x128xf32, #tpu.memory_space<vmem>>, %arg20: memref<8x192xf32, #tpu.memory_space<vmem>>, %arg21: memref<8x128xf32, #tpu.memory_space<vmem>>) attributes {dimension_semantics = [#tpu.dimension_semantics<arbitrary>], iteration_bounds = array<i64: 2>, scalar_prefetch = 2 : i64, scratch_operands = 4 : i64, tpu.core_type = #tpu.core_type<tc>, window_params = [{pipeline_mode = #tpu.pipeline_mode<synchronous>, transform_indices = @transform_0, window_bounds = array<i64: 8, 32>}, {pipeline_mode = #tpu.pipeline_mode<synchronous>, transform_indices = @transform_1, window_bounds = array<i64: 8, 96>}, {transform_indices = @transform_2, window_bounds = array<i64: 8, 160>}, {pipeline_mode = #tpu.pipeline_mode<synchronous>, transform_indices = @transform_3, window_bounds = array<i64: 32, 32>}, {pipeline_mode = #tpu.pipeline_mode<synchronous>, transform_indices = @transform_4, window_bounds = array<i64: 1, 32>}, {pipeline_mode = #tpu.pipeline_mode<synchronous>, transform_indices = @transform_5, window_bounds = array<i64: 32, 96>}, {pipeline_mode = #tpu.pipeline_mode<synchronous>, transform_indices = @transform_6, window_bounds = array<i64: 1, 96>}, {pipeline_mode = #tpu.pipeline_mode<synchronous>, transform_indices = @transform_7, window_bounds = array<i64: 32, 64>}, {pipeline_mode = #tpu.pipeline_mode<synchronous>, transform_indices = @transform_8, window_bounds = array<i64: 1, 64>}, {pipeline_mode = #tpu.pipeline_mode<synchronous>, transform_indices = @transform_9, window_bounds = array<i64: 32, 32>}, {pipeline_mode = #tpu.pipeline_mode<synchronous>, transform_indices = @transform_10, window_bounds = array<i64: 32, 32>}, {pipeline_mode = #tpu.pipeline_mode<synchronous>, transform_indices = @transform_11, window_bounds = array<i64: 1, 32>}, {pipeline_mode = #tpu.pipeline_mode<synchronous>, transform_indices = @transform_12, window_bounds = array<i64: 32, 96>}, {pipeline_mode = #tpu.pipeline_mode<synchronous>, transform_indices = @transform_13, window_bounds = array<i64: 1, 96>}, {pipeline_mode = #tpu.pipeline_mode<synchronous>, transform_indices = @transform_14, window_bounds = array<i64: 8, 128>}]} {
    %c0_i32 = arith.constant 0 : i32
    %0 = arith.cmpi eq, %arg0, %c0_i32 : i32
    %1 = arith.extui %0 : i1 to i32
    %c0_i32_0 = arith.constant 0 : i32
    %2 = arith.cmpi ne, %1, %c0_i32_0 : i32
    scf.if %2 {
      %c0_15 = arith.constant 0 : index
      %c0_16 = arith.constant 0 : index
      %37 = vector.load %arg3[%c0_15, %c0_16] : memref<8x32xf32, #tpu.memory_space<vmem>>, vector<8x32xf32>
      %c0_17 = arith.constant 0 : index
      %c0_18 = arith.constant 0 : index
      %38 = vector.load %arg4[%c0_17, %c0_18] : memref<8x96xf32, #tpu.memory_space<vmem>>, vector<8x96xf32>
      %c0_19 = arith.constant 0 : index
      %c0_20 = arith.constant 0 : index
      %39 = vector.load %arg6[%c0_19, %c0_20] : memref<32x32xf32, #tpu.memory_space<vmem>>, vector<32x32xf32>
      %cst = arith.constant dense<0.000000e+00> : vector<8x32xf32>
      %40 = tpu.matmul %37, %39, %cst {dimension_numbers = #tpu.dot_dimension_numbers<[1], [0], [0], [1], [0, 0, 1, 1], [], []>} : vector<8x32xf32>, vector<32x32xf32>, vector<8x32xf32> -> vector<8x32xf32>
      %c0_21 = arith.constant 0 : index
      %c0_22 = arith.constant 0 : index
      %41 = vector.load %arg7[%c0_21, %c0_22] : memref<1x32xf32, #tpu.memory_space<vmem>>, vector<1x32xf32>
      %42 = vector.broadcast %41 : vector<1x32xf32> to vector<8x32xf32>
      %43 = arith.addf %40, %42 : vector<8x32xf32>
      %44 = arith.negf %43 : vector<8x32xf32>
      %45 = math.exp %44 : vector<8x32xf32>
      %cst_23 = arith.constant 1.000000e+00 : f32
      %46 = vector.broadcast %cst_23 : f32 to vector<8x32xf32>
      %47 = arith.addf %46, %45 : vector<8x32xf32>
      %48 = arith.divf %46, %47 : vector<8x32xf32>
      %49 = arith.mulf %43, %48 : vector<8x32xf32>
      %c0_24 = arith.constant 0 : index
      %c0_25 = arith.constant 0 : index
      %50 = vector.load %arg8[%c0_24, %c0_25] : memref<32x96xf32, #tpu.memory_space<vmem>>, vector<32x96xf32>
      %cst_26 = arith.constant dense<0.000000e+00> : vector<8x96xf32>
      %51 = tpu.matmul %49, %50, %cst_26 {dimension_numbers = #tpu.dot_dimension_numbers<[1], [0], [0], [1], [0, 0, 1, 1], [], []>} : vector<8x32xf32>, vector<32x96xf32>, vector<8x96xf32> -> vector<8x96xf32>
      %c0_27 = arith.constant 0 : index
      %c0_28 = arith.constant 0 : index
      %52 = vector.load %arg9[%c0_27, %c0_28] : memref<1x96xf32, #tpu.memory_space<vmem>>, vector<1x96xf32>
      %53 = vector.broadcast %52 : vector<1x96xf32> to vector<8x96xf32>
      %54 = arith.addf %51, %53 : vector<8x96xf32>
      %c0_29 = arith.constant 0 : index
      %c0_30 = arith.constant 0 : index
      %55 = vector.load %arg18[%c0_29, %c0_30] : memref<8x192xf32, #tpu.memory_space<vmem>>, vector<8x96xf32>
      tpu.vector_store %arg18[%c0_29, %c0_30], %54 {strides = array<i32>} : memref<8x192xf32, #tpu.memory_space<vmem>>, vector<8x96xf32>,
      %c0_31 = arith.constant 0 : index
      %c96 = arith.constant 96 : index
      %56 = vector.load %arg18[%c0_31, %c96] : memref<8x192xf32, #tpu.memory_space<vmem>>, vector<8x96xf32>
      tpu.vector_store %arg18[%c0_31, %c96], %38 {strides = array<i32>} : memref<8x192xf32, #tpu.memory_space<vmem>>, vector<8x96xf32>,
      %c0_32 = arith.constant 0 : index
      %c0_33 = arith.constant 0 : index
      %57 = vector.load %arg19[%c0_32, %c0_33] : memref<8x128xf32, #tpu.memory_space<vmem>>, vector<8x32xf32>
      tpu.vector_store %arg19[%c0_32, %c0_33], %37 {strides = array<i32>} : memref<8x128xf32, #tpu.memory_space<vmem>>, vector<8x32xf32>,
      %c0_34 = arith.constant 0 : index
      %c32 = arith.constant 32 : index
      %58 = vector.load %arg19[%c0_34, %c32] : memref<8x128xf32, #tpu.memory_space<vmem>>, vector<8x96xf32>
      tpu.vector_store %arg19[%c0_34, %c32], %38 {strides = array<i32>} : memref<8x128xf32, #tpu.memory_space<vmem>>, vector<8x96xf32>,
    } else {
    }
    %c8_i32 = arith.constant 8 : i32
    %3 = arith.muli %arg0, %c8_i32 : i32
    %c0_i32_1 = arith.constant 0 : i32
    %c8_i32_2 = arith.constant 8 : i32
    %4 = arith.addi %c0_i32_1, %c8_i32_2 : i32
    %c1_i32 = arith.constant 1 : i32
    scf.for %arg22 = %c0_i32_1 to %4 step %c1_i32  : i32 {
      %c1_i32_15 = arith.constant 1 : i32
      %37 = arith.muli %arg22, %c1_i32_15 : i32
      %c0_i32_16 = arith.constant 0 : i32
      %38 = arith.addi %c0_i32_16, %37 : i32
      %39 = arith.addi %3, %38 : i32
      %40 = arith.index_cast %39 : i32 to index
      %41 = memref.load %arg2[%40] : memref<16xi32, #tpu.memory_space<smem>>
      %c0_i32_17 = arith.constant 0 : i32
      %c7_i32 = arith.constant 7 : i32
      %42 = arith.maxsi %c0_i32_17, %41 : i32
      %43 = arith.minsi %c7_i32, %42 : i32
      %44 = arith.index_cast %43 : i32 to index
      %c0_18 = arith.constant 0 : index
      %45 = vector.load %arg18[%44, %c0_18] : memref<8x192xf32, #tpu.memory_space<vmem>>, vector<1x192xf32>
      %46 = arith.index_cast %38 : i32 to index
      %c0_19 = arith.constant 0 : index
      %47 = vector.load %arg20[%46, %c0_19] : memref<8x192xf32, #tpu.memory_space<vmem>>, vector<1x192xf32>
      tpu.vector_store %arg20[%46, %c0_19], %45 {strides = array<i32>} : memref<8x192xf32, #tpu.memory_space<vmem>>, vector<1x192xf32>,
    }
    %c8_i32_3 = arith.constant 8 : i32
    %c0 = arith.constant 0 : index
    %c0_4 = arith.constant 0 : index
    %5 = vector.load %arg20[%c0, %c0_4] : memref<8x192xf32, #tpu.memory_space<vmem>>, vector<8x192xf32>
    %6 = vector.extract_strided_slice %5 {offsets = [0, 0], sizes = [8, 96], strides = [1, 1]} : vector<8x192xf32> to vector<8x96xf32>
    %7 = vector.extract_strided_slice %5 {offsets = [0, 96], sizes = [8, 96], strides = [1, 1]} : vector<8x192xf32> to vector<8x96xf32>
    %c0_5 = arith.constant 0 : index
    %c0_6 = arith.constant 0 : index
    %8 = vector.load %arg5[%c0_5, %c0_6] : memref<8x160xf32, #tpu.memory_space<vmem>>, vector<8x160xf32>
    %9 = vector.extract_strided_slice %8 {offsets = [0, 0], sizes = [8, 32], strides = [1, 1]} : vector<8x160xf32> to vector<8x32xf32>
    %10 = vector.extract_strided_slice %6 {offsets = [0, 0], sizes = [8, 32], strides = [1, 1]} : vector<8x96xf32> to vector<8x32xf32>
    %11 = arith.mulf %9, %10 : vector<8x32xf32>
    %12 = vector.extract_strided_slice %8 {offsets = [0, 128], sizes = [8, 32], strides = [1, 1]} : vector<8x160xf32> to vector<8x32xf32>
    %13 = vector.extract_strided_slice %6 {offsets = [0, 64], sizes = [8, 32], strides = [1, 1]} : vector<8x96xf32> to vector<8x32xf32>
    %14 = arith.mulf %12, %13 : vector<8x32xf32>
    %15 = vector.extract_strided_slice %6 {offsets = [0, 32], sizes = [8, 32], strides = [1, 1]} : vector<8x96xf32> to vector<8x32xf32>
    %16 = vector.extract_strided_slice %8 {offsets = [0, 32], sizes = [8, 32], strides = [1, 1]} : vector<8x160xf32> to vector<8x32xf32>
    %17 = arith.mulf %16, %15 : vector<8x32xf32>
    %18 = vector.extract_strided_slice %7 {offsets = [0, 0], sizes = [8, 32], strides = [1, 1]} : vector<8x96xf32> to vector<8x32xf32>
    %19 = arith.mulf %14, %18 : vector<8x32xf32>
    %20 = arith.addf %17, %19 : vector<8x32xf32>
    %21 = vector.extract_strided_slice %8 {offsets = [0, 64], sizes = [8, 32], strides = [1, 1]} : vector<8x160xf32> to vector<8x32xf32>
    %22 = arith.mulf %21, %15 : vector<8x32xf32>
    %23 = vector.extract_strided_slice %7 {offsets = [0, 32], sizes = [8, 32], strides = [1, 1]} : vector<8x96xf32> to vector<8x32xf32>
    %24 = arith.mulf %14, %23 : vector<8x32xf32>
    %25 = arith.addf %22, %24 : vector<8x32xf32>
    %26 = vector.extract_strided_slice %8 {offsets = [0, 96], sizes = [8, 32], strides = [1, 1]} : vector<8x160xf32> to vector<8x32xf32>
    %27 = arith.mulf %26, %15 : vector<8x32xf32>
    %28 = vector.extract_strided_slice %7 {offsets = [0, 64], sizes = [8, 32], strides = [1, 1]} : vector<8x96xf32> to vector<8x32xf32>
    %29 = arith.mulf %14, %28 : vector<8x32xf32>
    %30 = arith.addf %27, %29 : vector<8x32xf32>
    %31 = tpu.concatenate %11, %20, %25, %30 in 1 : vector<8x32xf32>, vector<8x32xf32>, vector<8x32xf32>, vector<8x32xf32> -> vector<8x128xf32>
    %c0_7 = arith.constant 0 : index
    %c0_8 = arith.constant 0 : index
    %32 = vector.load %arg21[%c0_7, %c0_8] : memref<8x128xf32, #tpu.memory_space<vmem>>, vector<8x128xf32>
    tpu.vector_store %arg21[%c0_7, %c0_8], %31 {strides = array<i32>} : memref<8x128xf32, #tpu.memory_space<vmem>>, vector<8x128xf32>,
    %c0_i32_9 = arith.constant 0 : i32
    %c8_i32_10 = arith.constant 8 : i32
    %33 = arith.addi %c0_i32_9, %c8_i32_10 : i32
    %c1_i32_11 = arith.constant 1 : i32
    scf.for %arg22 = %c0_i32_9 to %33 step %c1_i32_11  : i32 {
      %c1_i32_15 = arith.constant 1 : i32
      %37 = arith.muli %arg22, %c1_i32_15 : i32
      %c0_i32_16 = arith.constant 0 : i32
      %38 = arith.addi %c0_i32_16, %37 : i32
      %39 = arith.addi %3, %38 : i32
      %40 = arith.index_cast %39 : i32 to index
      %41 = memref.load %arg1[%40] : memref<16xi32, #tpu.memory_space<smem>>
      %c0_i32_17 = arith.constant 0 : i32
      %42 = arith.cmpi sge, %41, %c0_i32_17 : i32
      %c8_i32_18 = arith.constant 8 : i32
      %43 = arith.cmpi slt, %41, %c8_i32_18 : i32
      %44 = arith.andi %42, %43 : i1
      %45 = arith.extui %44 : i1 to i32
      %c0_i32_19 = arith.constant 0 : i32
      %46 = arith.cmpi ne, %45, %c0_i32_19 : i32
      scf.if %46 {
        %47 = arith.index_cast %41 : i32 to index
        %c0_20 = arith.constant 0 : index
        %48 = vector.load %arg19[%47, %c0_20] : memref<8x128xf32, #tpu.memory_space<vmem>>, vector<1x128xf32>
        %49 = arith.index_cast %38 : i32 to index
        %c0_21 = arith.constant 0 : index
        %50 = vector.load %arg21[%49, %c0_21] : memref<8x128xf32, #tpu.memory_space<vmem>>, vector<1x128xf32>
        %51 = arith.addf %48, %50 : vector<1x128xf32>
        %52 = arith.index_cast %41 : i32 to index
        %c0_22 = arith.constant 0 : index
        %53 = vector.load %arg19[%52, %c0_22] : memref<8x128xf32, #tpu.memory_space<vmem>>, vector<1x128xf32>
        tpu.vector_store %arg19[%52, %c0_22], %51 {strides = array<i32>} : memref<8x128xf32, #tpu.memory_space<vmem>>, vector<1x128xf32>,
      } else {
      }
    }
    %c8_i32_12 = arith.constant 8 : i32
    %c1_i32_13 = arith.constant 1 : i32
    %34 = arith.cmpi eq, %arg0, %c1_i32_13 : i32
    %35 = arith.extui %34 : i1 to i32
    %c0_i32_14 = arith.constant 0 : i32
    %36 = arith.cmpi ne, %35, %c0_i32_14 : i32
    scf.if %36 {
      %c0_15 = arith.constant 0 : index
      %c0_16 = arith.constant 0 : index
      %37 = vector.load %arg19[%c0_15, %c0_16] : memref<8x128xf32, #tpu.memory_space<vmem>>, vector<8x32xf32>
      %c0_17 = arith.constant 0 : index
      %c32 = arith.constant 32 : index
      %38 = vector.load %arg19[%c0_17, %c32] : memref<8x128xf32, #tpu.memory_space<vmem>>, vector<8x32xf32>
      %c0_18 = arith.constant 0 : index
      %c64 = arith.constant 64 : index
      %39 = vector.load %arg19[%c0_18, %c64] : memref<8x128xf32, #tpu.memory_space<vmem>>, vector<8x32xf32>
      %c0_19 = arith.constant 0 : index
      %c96 = arith.constant 96 : index
      %40 = vector.load %arg19[%c0_19, %c96] : memref<8x128xf32, #tpu.memory_space<vmem>>, vector<8x32xf32>
      %c0_20 = arith.constant 0 : index
      %c0_21 = arith.constant 0 : index
      %41 = vector.load %arg10[%c0_20, %c0_21] : memref<32x64xf32, #tpu.memory_space<vmem>>, vector<32x64xf32>
      %c0_22 = arith.constant 0 : index
      %c0_23 = arith.constant 0 : index
      %42 = vector.load %arg11[%c0_22, %c0_23] : memref<1x64xf32, #tpu.memory_space<vmem>>, vector<1x64xf32>
      %cst = arith.constant dense<0.000000e+00> : vector<8x64xf32>
      %43 = tpu.matmul %38, %41, %cst {dimension_numbers = #tpu.dot_dimension_numbers<[1], [0], [0], [1], [0, 0, 1, 1], [], []>} : vector<8x32xf32>, vector<32x64xf32>, vector<8x64xf32> -> vector<8x64xf32>
      %44 = vector.broadcast %42 : vector<1x64xf32> to vector<8x64xf32>
      %45 = arith.addf %43, %44 : vector<8x64xf32>
      %cst_24 = arith.constant dense<0.000000e+00> : vector<8x64xf32>
      %46 = tpu.matmul %39, %41, %cst_24 {dimension_numbers = #tpu.dot_dimension_numbers<[1], [0], [0], [1], [0, 0, 1, 1], [], []>} : vector<8x32xf32>, vector<32x64xf32>, vector<8x64xf32> -> vector<8x64xf32>
      %47 = vector.broadcast %42 : vector<1x64xf32> to vector<8x64xf32>
      %48 = arith.addf %46, %47 : vector<8x64xf32>
      %cst_25 = arith.constant dense<0.000000e+00> : vector<8x64xf32>
      %49 = tpu.matmul %40, %41, %cst_25 {dimension_numbers = #tpu.dot_dimension_numbers<[1], [0], [0], [1], [0, 0, 1, 1], [], []>} : vector<8x32xf32>, vector<32x64xf32>, vector<8x64xf32> -> vector<8x64xf32>
      %50 = vector.broadcast %42 : vector<1x64xf32> to vector<8x64xf32>
      %51 = arith.addf %49, %50 : vector<8x64xf32>
      %52 = vector.extract_strided_slice %45 {offsets = [0, 0], sizes = [8, 32], strides = [1, 1]} : vector<8x64xf32> to vector<8x32xf32>
      %53 = vector.extract_strided_slice %45 {offsets = [0, 32], sizes = [8, 32], strides = [1, 1]} : vector<8x64xf32> to vector<8x32xf32>
      %54 = vector.extract_strided_slice %48 {offsets = [0, 0], sizes = [8, 32], strides = [1, 1]} : vector<8x64xf32> to vector<8x32xf32>
      %55 = vector.extract_strided_slice %48 {offsets = [0, 32], sizes = [8, 32], strides = [1, 1]} : vector<8x64xf32> to vector<8x32xf32>
      %56 = vector.extract_strided_slice %51 {offsets = [0, 0], sizes = [8, 32], strides = [1, 1]} : vector<8x64xf32> to vector<8x32xf32>
      %57 = vector.extract_strided_slice %51 {offsets = [0, 32], sizes = [8, 32], strides = [1, 1]} : vector<8x64xf32> to vector<8x32xf32>
      %58 = arith.mulf %52, %52 : vector<8x32xf32>
      %59 = arith.mulf %54, %54 : vector<8x32xf32>
      %60 = arith.addf %58, %59 : vector<8x32xf32>
      %61 = arith.mulf %56, %56 : vector<8x32xf32>
      %62 = arith.addf %60, %61 : vector<8x32xf32>
      %cst_26 = arith.constant 9.99999993E-9 : f32
      %63 = vector.broadcast %cst_26 : f32 to vector<8x32xf32>
      %64 = arith.addf %62, %63 : vector<8x32xf32>
      %65 = math.sqrt %64 : vector<8x32xf32>
      %66 = arith.mulf %52, %53 : vector<8x32xf32>
      %67 = arith.mulf %54, %55 : vector<8x32xf32>
      %68 = arith.addf %66, %67 : vector<8x32xf32>
      %69 = arith.mulf %56, %57 : vector<8x32xf32>
      %70 = arith.addf %68, %69 : vector<8x32xf32>
      %c0_27 = arith.constant 0 : index
      %c0_28 = arith.constant 0 : index
      %71 = vector.load %arg12[%c0_27, %c0_28] : memref<32x32xf32, #tpu.memory_space<vmem>>, vector<32x32xf32>
      %cst_29 = arith.constant dense<0.000000e+00> : vector<8x32xf32>
      %72 = tpu.matmul %37, %71, %cst_29 {dimension_numbers = #tpu.dot_dimension_numbers<[1], [0], [0], [1], [0, 0, 1, 1], [], []>} : vector<8x32xf32>, vector<32x32xf32>, vector<8x32xf32> -> vector<8x32xf32>
      %c0_30 = arith.constant 0 : index
      %c0_31 = arith.constant 0 : index
      %73 = vector.load %arg13[%c0_30, %c0_31] : memref<32x32xf32, #tpu.memory_space<vmem>>, vector<32x32xf32>
      %cst_32 = arith.constant dense<0.000000e+00> : vector<8x32xf32>
      %74 = tpu.matmul %65, %73, %cst_32 {dimension_numbers = #tpu.dot_dimension_numbers<[1], [0], [0], [1], [0, 0, 1, 1], [], []>} : vector<8x32xf32>, vector<32x32xf32>, vector<8x32xf32> -> vector<8x32xf32>
      %75 = arith.addf %72, %74 : vector<8x32xf32>
      %c0_33 = arith.constant 0 : index
      %c0_34 = arith.constant 0 : index
      %76 = vector.load %arg14[%c0_33, %c0_34] : memref<1x32xf32, #tpu.memory_space<vmem>>, vector<1x32xf32>
      %77 = vector.broadcast %76 : vector<1x32xf32> to vector<8x32xf32>
      %78 = arith.addf %75, %77 : vector<8x32xf32>
      %79 = arith.negf %78 : vector<8x32xf32>
      %80 = math.exp %79 : vector<8x32xf32>
      %cst_35 = arith.constant 1.000000e+00 : f32
      %81 = vector.broadcast %cst_35 : f32 to vector<8x32xf32>
      %82 = arith.addf %81, %80 : vector<8x32xf32>
      %83 = arith.divf %81, %82 : vector<8x32xf32>
      %84 = arith.mulf %78, %83 : vector<8x32xf32>
      %c0_36 = arith.constant 0 : index
      %c0_37 = arith.constant 0 : index
      %85 = vector.load %arg15[%c0_36, %c0_37] : memref<32x96xf32, #tpu.memory_space<vmem>>, vector<32x96xf32>
      %cst_38 = arith.constant dense<0.000000e+00> : vector<8x96xf32>
      %86 = tpu.matmul %84, %85, %cst_38 {dimension_numbers = #tpu.dot_dimension_numbers<[1], [0], [0], [1], [0, 0, 1, 1], [], []>} : vector<8x32xf32>, vector<32x96xf32>, vector<8x96xf32> -> vector<8x96xf32>
      %c0_39 = arith.constant 0 : index
      %c0_40 = arith.constant 0 : index
      %87 = vector.load %arg16[%c0_39, %c0_40] : memref<1x96xf32, #tpu.memory_space<vmem>>, vector<1x96xf32>
      %88 = vector.broadcast %87 : vector<1x96xf32> to vector<8x96xf32>
      %89 = arith.addf %86, %88 : vector<8x96xf32>
      %90 = vector.extract_strided_slice %89 {offsets = [0, 0], sizes = [8, 32], strides = [1, 1]} : vector<8x96xf32> to vector<8x32xf32>
      %91 = vector.extract_strided_slice %89 {offsets = [0, 32], sizes = [8, 32], strides = [1, 1]} : vector<8x96xf32> to vector<8x32xf32>
      %92 = vector.extract_strided_slice %89 {offsets = [0, 64], sizes = [8, 32], strides = [1, 1]} : vector<8x96xf32> to vector<8x32xf32>
      %93 = arith.mulf %92, %70 : vector<8x32xf32>
      %94 = arith.addf %90, %93 : vector<8x32xf32>
      %95 = arith.mulf %91, %53 : vector<8x32xf32>
      %96 = arith.mulf %91, %55 : vector<8x32xf32>
      %97 = arith.mulf %91, %57 : vector<8x32xf32>
      %98 = tpu.concatenate %94, %95, %96, %97 in 1 : vector<8x32xf32>, vector<8x32xf32>, vector<8x32xf32>, vector<8x32xf32> -> vector<8x128xf32>
      %c0_41 = arith.constant 0 : index
      %c0_42 = arith.constant 0 : index
      %99 = vector.load %arg17[%c0_41, %c0_42] : memref<8x128xf32, #tpu.memory_space<vmem>>, vector<8x128xf32>
      tpu.vector_store %arg17[%c0_41, %c0_42], %98 {strides = array<i32>} : memref<8x128xf32, #tpu.memory_space<vmem>>, vector<8x128xf32>,
    } else {
    }
    return
  }
  func.func @transform_0(%arg0: i32, %arg1: memref<16xi32, #tpu.memory_space<smem>>, %arg2: memref<16xi32, #tpu.memory_space<smem>>) -> (i32, i32) {
    %c0_i32 = arith.constant 0 : i32
    %c0_i32_0 = arith.constant 0 : i32
    %c0_i32_1 = arith.constant 0 : i32
    return %c0_i32, %c0_i32_0 : i32, i32
  }
  func.func @transform_1(%arg0: i32, %arg1: memref<16xi32, #tpu.memory_space<smem>>, %arg2: memref<16xi32, #tpu.memory_space<smem>>) -> (i32, i32) {
    %c0_i32 = arith.constant 0 : i32
    %c0_i32_0 = arith.constant 0 : i32
    %c0_i32_1 = arith.constant 0 : i32
    return %c0_i32, %c0_i32_0 : i32, i32
  }
  func.func @transform_2(%arg0: i32, %arg1: memref<16xi32, #tpu.memory_space<smem>>, %arg2: memref<16xi32, #tpu.memory_space<smem>>) -> (i32, i32) {
    %c0_i32 = arith.constant 0 : i32
    %c0_i32_0 = arith.constant 0 : i32
    return %arg0, %c0_i32 : i32, i32
  }
  func.func @transform_3(%arg0: i32, %arg1: memref<16xi32, #tpu.memory_space<smem>>, %arg2: memref<16xi32, #tpu.memory_space<smem>>) -> (i32, i32) {
    %c0_i32 = arith.constant 0 : i32
    %c0_i32_0 = arith.constant 0 : i32
    %c0_i32_1 = arith.constant 0 : i32
    return %c0_i32, %c0_i32_0 : i32, i32
  }
  func.func @transform_4(%arg0: i32, %arg1: memref<16xi32, #tpu.memory_space<smem>>, %arg2: memref<16xi32, #tpu.memory_space<smem>>) -> (i32, i32) {
    %c0_i32 = arith.constant 0 : i32
    %c0_i32_0 = arith.constant 0 : i32
    %c0_i32_1 = arith.constant 0 : i32
    return %c0_i32, %c0_i32_0 : i32, i32
  }
  func.func @transform_5(%arg0: i32, %arg1: memref<16xi32, #tpu.memory_space<smem>>, %arg2: memref<16xi32, #tpu.memory_space<smem>>) -> (i32, i32) {
    %c0_i32 = arith.constant 0 : i32
    %c0_i32_0 = arith.constant 0 : i32
    %c0_i32_1 = arith.constant 0 : i32
    return %c0_i32, %c0_i32_0 : i32, i32
  }
  func.func @transform_6(%arg0: i32, %arg1: memref<16xi32, #tpu.memory_space<smem>>, %arg2: memref<16xi32, #tpu.memory_space<smem>>) -> (i32, i32) {
    %c0_i32 = arith.constant 0 : i32
    %c0_i32_0 = arith.constant 0 : i32
    %c0_i32_1 = arith.constant 0 : i32
    return %c0_i32, %c0_i32_0 : i32, i32
  }
  func.func @transform_7(%arg0: i32, %arg1: memref<16xi32, #tpu.memory_space<smem>>, %arg2: memref<16xi32, #tpu.memory_space<smem>>) -> (i32, i32) {
    %c0_i32 = arith.constant 0 : i32
    %c0_i32_0 = arith.constant 0 : i32
    %c0_i32_1 = arith.constant 0 : i32
    return %c0_i32, %c0_i32_0 : i32, i32
  }
  func.func @transform_8(%arg0: i32, %arg1: memref<16xi32, #tpu.memory_space<smem>>, %arg2: memref<16xi32, #tpu.memory_space<smem>>) -> (i32, i32) {
    %c0_i32 = arith.constant 0 : i32
    %c0_i32_0 = arith.constant 0 : i32
    %c0_i32_1 = arith.constant 0 : i32
    return %c0_i32, %c0_i32_0 : i32, i32
  }
  func.func @transform_9(%arg0: i32, %arg1: memref<16xi32, #tpu.memory_space<smem>>, %arg2: memref<16xi32, #tpu.memory_space<smem>>) -> (i32, i32) {
    %c0_i32 = arith.constant 0 : i32
    %c0_i32_0 = arith.constant 0 : i32
    %c0_i32_1 = arith.constant 0 : i32
    return %c0_i32, %c0_i32_0 : i32, i32
  }
  func.func @transform_10(%arg0: i32, %arg1: memref<16xi32, #tpu.memory_space<smem>>, %arg2: memref<16xi32, #tpu.memory_space<smem>>) -> (i32, i32) {
    %c0_i32 = arith.constant 0 : i32
    %c0_i32_0 = arith.constant 0 : i32
    %c0_i32_1 = arith.constant 0 : i32
    return %c0_i32, %c0_i32_0 : i32, i32
  }
  func.func @transform_11(%arg0: i32, %arg1: memref<16xi32, #tpu.memory_space<smem>>, %arg2: memref<16xi32, #tpu.memory_space<smem>>) -> (i32, i32) {
    %c0_i32 = arith.constant 0 : i32
    %c0_i32_0 = arith.constant 0 : i32
    %c0_i32_1 = arith.constant 0 : i32
    return %c0_i32, %c0_i32_0 : i32, i32
  }
  func.func @transform_12(%arg0: i32, %arg1: memref<16xi32, #tpu.memory_space<smem>>, %arg2: memref<16xi32, #tpu.memory_space<smem>>) -> (i32, i32) {
    %c0_i32 = arith.constant 0 : i32
    %c0_i32_0 = arith.constant 0 : i32
    %c0_i32_1 = arith.constant 0 : i32
    return %c0_i32, %c0_i32_0 : i32, i32
  }
  func.func @transform_13(%arg0: i32, %arg1: memref<16xi32, #tpu.memory_space<smem>>, %arg2: memref<16xi32, #tpu.memory_space<smem>>) -> (i32, i32) {
    %c0_i32 = arith.constant 0 : i32
    %c0_i32_0 = arith.constant 0 : i32
    %c0_i32_1 = arith.constant 0 : i32
    return %c0_i32, %c0_i32_0 : i32, i32
  }
  func.func @transform_14(%arg0: i32, %arg1: memref<16xi32, #tpu.memory_space<smem>>, %arg2: memref<16xi32, #tpu.memory_space<smem>>) -> (i32, i32) {
    %c0_i32 = arith.constant 0 : i32
    %c0_i32_0 = arith.constant 0 : i32
    %c0_i32_1 = arith.constant 0 : i32
    return %c0_i32, %c0_i32_0 : i32, i32
  }
}

</mosaic_0001>

<bundles_post_ra>
// kernel: tpu_custom_call.1
= control target key start
LH: loop header
LB: loop body
LE: loop exit
PB: predicated region body
PF: predicated region fallthrough
CT: control target
= control target key end

     0   :  { %s2306_s21 = smov [#allocation7]   ;;  %s2764_s0 = inlined_call_operand.hbm [shape: s32[16], index: 0, kind: input, shape index: {}]   ;;  %s2765_s2 = inlined_call_operand.hbm [shape: f32[8,32], index: 2, kind: input, shape index: {}]   ;;  %s2766_s3 = inlined_call_operand.hbm [shape: f32[8,96], index: 3, kind: input, shape index: {}]   ;;  %s2767_s4 = inlined_call_operand.hbm [shape: f32[16,160], index: 4, kind: input, shape index: {}]   ;;  %s2768_s5 = inlined_call_operand.hbm [shape: f32[32,32], index: 5, kind: input, shape index: {}]   ;;  %s2769_s6 = inlined_call_operand.vmem [shape: f32[1,32], index: 6, kind: input, shape index: {}]   ;;  %s2770_s7 = inlined_call_operand.hbm [shape: f32[32,96], index: 7, kind: input, shape index: {}]   ;;  %s2771_s8 = inlined_call_operand.vmem [shape: f32[1,96], index: 8, kind: input, shape index: {}]   ;;  %s2772_s9 = inlined_call_operand.hbm [shape: f32[32,64], index: 9, kind: input, shape index: {}]   ;;  %s2773_s10 = inlined_call_operand.vmem [shape: f32[1,64], index: 10, kind: input, shape index: {}]   ;;  %s2774_s11 = inlined_call_operand.hbm [shape: f32[32,32], index: 11, kind: input, shape index: {}]   ;;  %s2775_s12 = inlined_call_operand.hbm [shape: f32[32,32], index: 12, kind: input, shape index: {}]   ;;  %s2776_s13 = inlined_call_operand.vmem [shape: f32[1,32], index: 13, kind: input, shape index: {}]   ;;  %s2777_s14 = inlined_call_operand.hbm [shape: f32[32,96], index: 14, kind: input, shape index: {}]   ;;  %s2778_s15 = inlined_call_operand.vmem [shape: f32[1,96], index: 15, kind: input, shape index: {}]   ;;  %s2779_s16 = inlined_call_operand.hbm [shape: f32[8,128], index: 16, kind: output, shape index: {}]   ;;  %s2780_s1 = inlined_call_operand.vmem [shape: s32[16], index: 1, kind: input, shape index: {}]  }
   0x1   :  { %2784 = sst [smem:[#allocation34_spill]] %s2764_s0  ;;  %s23_s26 = sshll.u32 %s2780_s1, 4  ;;  %s24_s26 = int_to_ptr.vmem [resolvable:$true] %s23_s26 }
   0x2   :  { %2785 = sst [smem:[#allocation35_spill]] %s2765_s2  ;;  %s1952_s27 = scalar_lea.vmem %s24_s26, 16 }
   0x3   :  { %2786 = sst [smem:[#allocation36_spill]] %s2766_s3  ;;  %p1953_p0 = scmp.ne.s32.totalorder %s24_s26, %s1952_s27 }
   0x4   :  { %2787 = sst [smem:[#allocation37_spill]] %s2768_s5  ;;  %p1957_p1 = scmp.lt.s32.totalorder %s24_s26, %s24_s26 }
   0x5   :  { %2788 = sst [smem:[#allocation38_spill]] %s2770_s7  ;;  %p1958_p2 = scmp.lt.s32.totalorder %s1952_s27, %s1952_s27 }
   0x6   :  { %2789 = sst [smem:[#allocation39_spill]] %s2773_s10 }
   0x7   :  { %s2790_s10 = sld [smem:[#allocation34_spill]]  ;;  %p1959_p3 = por %p1958_p2, %p1957_p1 }
   0x9   :  { %p1960_p4 = pnand %p1959_p3, %p1953_p0 }
   0xd   :  { %22 = dma.hbm_to_smem %s2790_s10, 16, %s2306_s21, [#allocation6] }
   0xe   :  { %1963 = shalt.err (!%p1960_p4)  }
   0xf   :  { %s2307_s28 = smov [#allocation8]  }
  0x10   :  { %26 = dma.vmem_to_smem %s24_s26, 16, %s2307_s28, [#allocation6] }
  0x11   :  { %2248 = dma.done.wait [#allocation6], 32 }
  0x12   :  { %2249 = vsyncadd [#allocation6], 4294967264 }
  0x13   :  { %28 = sfence }
  0x14   :  { %29 = vsyncpa [#allocation10], 0 }
  0x15   :  { %30 = vsyncpa [#allocation13], 0 }
  0x16   :  { %31 = vsyncpa [#allocation17], 0 }
  0x17   :  { %32 = vsyncpa [#allocation20], 0 }
  0x18   :  { %33 = vsyncpa [#allocation23], 0 }
  0x19   :  { %34 = vsyncpa [#allocation11], 0  ;;  %s2423_s1 = smov 0   ;;  %s2425_s10 = smov 0  }
  0x1a   :  { %s2427_s29 = smov 0   ;;  %s2429_s30 = smov 0  }
  0x1b LB: > { %s2308_s0 = smov [#allocation9]   ;;  %s2444_s18 = sadd.s32 4294967295, %s2296_s30   ;;  %s2296_s30 = sphi %s2429_s30, %s2820_s30   ;;  %s2292_s29 = sphi %s2427_s29, %s2819_s29   ;;  %s2288_s10 = sphi %s2425_s10, %s2818_s10   ;;  %s2284_s1 = sphi %s2423_s1, %s2817_s1  }
  0x1c   : > { %s378_s17 = sshll.u32 %s2308_s0, 4  ;;  %p1588_p5 = scmp.ge.s32.totalorder %s2296_s30, 1  ;;  %s379_s17 = int_to_ptr.vmem [resolvable:$true] %s378_s17 }
  0x1d   : > { %p2781_p6 = scmp.eq.s32.totalorder %s2444_s18, 0  ;;  %p365_p7 = scmp.lt.s32.totalorder %s2296_s30, 3 }
  0x1e   : > { %s2309_s20 = smov [#allocation12]   ;;  %s2310_s23 = smov [#allocation16]  }
  0x1f   : > { %p2450_p9 = pnand %p1588_p5, %p365_p7  ;;  %s389_s21 = sshll.u32 %s2309_s20, 4  ;;  %s390_s21 = int_to_ptr.vmem [resolvable:$true] %s389_s21 }
  0x20   : > { %s415_s24 = sshll.u32 %s2310_s23, 4  ;;  %s1975_s26 = scalar_lea.vmem %s379_s17, 128  ;;  %s2462_s24 = int_to_ptr.vmem [resolvable:$true] %s415_s24 }
  0x21   : > { %s2791_s19 = scalar_select %p2450_p9, 1, 0 }
  0x22   : > { %p1813_p10 = pneg %p2450_p9  ;;  %p1976_p13 = scmp.ne.s32.totalorder %s379_s17, %s1975_s26 }
  0x23   : > { %p1983_p2 = scmp.lt.s32.totalorder %s379_s17, %s379_s17  ;;  %p1984_p3 = scmp.lt.s32.totalorder %s1975_s26, %s1975_s26 }
  0x24   : > { %p2458_p11 = pnand %p1813_p10, %p2781_p6 }
  0x25   : > { %p1985_p4 = por %p1984_p3, %p1983_p2 }
  0x26   : > { %p2466_p12 = pneg %p2458_p11 }
  0x28   : > { %p1978_p0 = pnand %p1976_p13, %p2466_p12 }
  0x2a   : > { %p1979_p1 = pneg %p1978_p0 }
  0x2c   : > { %p1986_p5 = pnand %p1985_p4, %p1979_p1 }
  0x2e   : > { %1989 = shalt.err (!%p1986_p5)
}
  0x2f   : > { %s2794_s2 = sld [smem:[#allocation35_spill]]  ;;  %s2001_s0 = scalar_lea.vmem %s390_s21, 128 }
  0x30   : > { %p2002_p7 = scmp.ne.s32.totalorder %s390_s21, %s2001_s0  ;;  %p2009_p6 = scmp.lt.s32.totalorder %s390_s21, %s390_s21 }
  0x31   : > { %p2010_p13 = scmp.lt.s32.totalorder %s2001_s0, %s2001_s0 }
  0x32   : > { %p2004_p10 = pnand %p2002_p7, %p2466_p12 }
  0x33   : > { %p2011_p0 = por %p2010_p13, %p2009_p6 }
  0x34   : > { %p2005_p8 = pneg %p2004_p10 }
  0x35   : > { %1816 = dma.hbm_to_vmem [thread:$0]  (!%p2458_p11), %s2794_s2, 128, %s379_s17, [#allocation10]  }
  0x36   : > { %p2012_p9 = pnand %p2011_p0, %p2005_p8 }
  0x38   : > { %2015 = shalt.err (!%p2012_p9)
}
  0x39   : > { %s2795_s3 = sld [smem:[#allocation36_spill]]  ;;  %s2027_s17 = scalar_lea.vmem %s2462_s24, 512 }
  0x3a   : > { %p2028_p1 = scmp.ne.s32.totalorder %s2462_s24, %s2027_s17  ;;  %p2035_p4 = scmp.lt.s32.totalorder %s2462_s24, %s2462_s24 }
  0x3b   : > { %p2036_p6 = scmp.lt.s32.totalorder %s2027_s17, %s2027_s17 }
  0x3c   : > { %p2030_p2 = pnand %p2028_p1, %p2466_p12 }
  0x3d   : > { %p2037_p8 = por %p2036_p6, %p2035_p4 }
  0x3e   : > { %p2031_p3 = pneg %p2030_p2 }
  0x3f   : > { %1819 = dma.hbm_to_vmem [thread:$0]  (!%p2458_p11), %s2795_s3, 128, %s390_s21, [#allocation13]  }
  0x40   : > { %p2038_p9 = pnand %p2037_p8, %p2031_p3 }
  0x42   : > { %2041 = shalt.err (!%p2038_p9)
}
  0x43   : > { %s2311_s26 = smov 128   ;;  %s2312_s27 = smov 8  }
  0x44   : > { %s2796_s7 = sld [smem:[#allocation38_spill]]  ;;  %s2313_s0 = smov [#allocation19]  }
  0x45   : > { %s447_s20 = sshll.u32 %s2313_s0, 4  ;;  %s2314_s23 = smov [#allocation15]   ;;  %s448_s20 = int_to_ptr.vmem [resolvable:$true] %s447_s20 }
  0x46   : > { %s399_s17 = sshll.u32 %s2314_s23, 4  ;;  %s2053_s2 = scalar_lea.vmem %s448_s20, 512  ;;  %s400_s17 = int_to_ptr.vmem [resolvable:$true] %s399_s17 }
  0x47   : > { %p2054_p5 = scmp.ne.s32.totalorder %s448_s20, %s2053_s2  ;;  %p2061_p13 = scmp.lt.s32.totalorder %s448_s20, %s448_s20 }
  0x48   : > { %p2062_p0 = scmp.lt.s32.totalorder %s2053_s2, %s2053_s2 }
  0x49   : > { %p2056_p7 = pnand %p2054_p5, %p2466_p12 }
  0x4a   : > { %1825 = dma.hbm_to_vmem [thread:$0]  (!%p2458_p11), %s2796_s7, 512, %s2462_s24, [#allocation17], %s2311_s26, %s2311_s26, %s2312_s27  }
  0x4b   : > { %p2057_p10 = pneg %p2056_p7  ;;  %p2063_p1 = por %p2062_p0, %p2061_p13 }
  0x4d   : > { %p2064_p2 = pnand %p2063_p1, %p2057_p10 }
  0x4f   : > { %2067 = shalt.err (!%p2064_p2)
}
  0x50   : > { %1831 = dma.hbm_to_vmem [thread:$0]  (!%p2458_p11), %s2774_s11, 512, %s448_s20, [#allocation20], %s2311_s26, %s2311_s26, %s2312_s27  }
  0x51   : > { %s2079_s28 = scalar_lea.vmem %s400_s17, 512  ;;  %p2087_p8 = scmp.lt.s32.totalorder %s400_s17, %s400_s17 }
  0x52   : > { %p2080_p3 = scmp.ne.s32.totalorder %s400_s17, %s2079_s28  ;;  %p2088_p9 = scmp.lt.s32.totalorder %s2079_s28, %s2079_s28 }
  0x54   : > { %p2082_p4 = pnand %p2080_p3, %p2466_p12  ;;  %p2089_p5 = por %p2088_p9, %p2087_p8 }
  0x56   : > { %p2083_p6 = pneg %p2082_p4 }
  0x58   : > { %p2090_p7 = pnand %p2089_p5, %p2083_p6 }
  0x5a   : > { %2093 = shalt.err (!%p2090_p7)
}
  0x5b   : > { %s2797_s5 = sld [smem:[#allocation37_spill]]  ;;  %s2315_s20 = smov [#allocation18]  }
  0x5c   : > { %s431_s23 = sshll.u32 %s2315_s20, 4  ;;  %s2316_s24 = smov [#allocation21]   ;;  %s432_s23 = int_to_ptr.vmem [resolvable:$true] %s431_s23 }
  0x5d   : > { %s460_s21 = sshll.u32 %s2316_s24, 4  ;;  %s2105_s3 = scalar_lea.vmem %s432_s23, 512  ;;  %s461_s21 = int_to_ptr.vmem [resolvable:$true] %s460_s21 }
  0x5e   : > { %p2106_p10 = scmp.ne.s32.totalorder %s432_s23, %s2105_s3  ;;  %p2113_p1 = scmp.lt.s32.totalorder %s432_s23, %s432_s23 }
  0x5f   : > { %p2114_p2 = scmp.lt.s32.totalorder %s2105_s3, %s2105_s3 }
  0x60   : > { %p2108_p13 = pnand %p2106_p10, %p2466_p12 }
  0x61   : > { %1822 = dma.hbm_to_vmem [thread:$0]  (!%p2458_p11), %s2797_s5, 512, %s400_s17, [#allocation13], %s2311_s26, %s2311_s26, %s2312_s27  }
  0x62   : > { %p2109_p0 = pneg %p2108_p13  ;;  %p2115_p3 = por %p2114_p2, %p2113_p1 }
  0x64   : > { %p2116_p4 = pnand %p2115_p3, %p2109_p0 }
  0x66   : > { %2119 = shalt.err (!%p2116_p4)
}
  0x67   : > { %1828 = dma.hbm_to_vmem [thread:$0]  (!%p2458_p11), %s2772_s9, 512, %s432_s23, [#allocation17], %s2311_s26, %s2311_s26, %s2312_s27  }
  0x68   : > { %s2131_s2 = scalar_lea.vmem %s461_s21, 512  ;;  %p2139_p5 = scmp.lt.s32.totalorder %s461_s21, %s461_s21 }
  0x69   : > { %p2132_p6 = scmp.ne.s32.totalorder %s461_s21, %s2131_s2  ;;  %p2140_p7 = scmp.lt.s32.totalorder %s2131_s2, %s2131_s2 }
  0x6b   : > { %p2134_p8 = pnand %p2132_p6, %p2466_p12  ;;  %p2141_p10 = por %p2140_p7, %p2139_p5 }
  0x6d   : > { %p2135_p9 = pneg %p2134_p8 }
  0x6f   : > { %p2142_p13 = pnand %p2141_p10, %p2135_p9 }
  0x71   : > { %2145 = shalt.err (!%p2142_p13)
}
  0x72   : > { %1834 = dma.hbm_to_vmem [thread:$0]  (!%p2458_p11), %s2775_s12, 512, %s461_s21, [#allocation20], %s2311_s26, %s2311_s26, %s2312_s27  }
  0x73   : > { %s2317_s20 = smov [#allocation22]  }
  0x74   : > { %s476_s23 = sshll.u32 %s2317_s20, 4  ;;  %s477_s23 = int_to_ptr.vmem [resolvable:$true] %s476_s23 }
  0x75   : > { %s2157_s24 = scalar_lea.vmem %s477_s23, 512  ;;  %p2165_p3 = scmp.lt.s32.totalorder %s477_s23, %s477_s23 }
  0x76   : > { %p2158_p0 = scmp.ne.s32.totalorder %s477_s23, %s2157_s24  ;;  %p2166_p4 = scmp.lt.s32.totalorder %s2157_s24, %s2157_s24 }
  0x78   : > { %p2160_p1 = pnand %p2158_p0, %p2466_p12  ;;  %p2167_p6 = por %p2166_p4, %p2165_p3 }
  0x7a   : > { %p2161_p2 = pneg %p2160_p1 }
  0x7c   : > { %p2168_p8 = pnand %p2167_p6, %p2161_p2 }
  0x7e   : > { %2171 = shalt.err (!%p2168_p8)
}
  0x7f   : > { %1837 = dma.hbm_to_vmem [thread:$0]  (!%p2458_p11), %s2777_s14, 512, %s477_s23, [#allocation23], %s2311_s26, %s2311_s26, %s2312_s27  }
  0x80   : > { %s2550_s22 = sadd.s32 1, %s2296_s30   ;;  %s89_s25 = sadd.s32 1, %s2292_s29 }
  0x81   : > { %s86_s28 = ssub.s32 %s2296_s30, %s2550_s22  ;;  %p96_p12 = scmp.ne.s32.totalorder %s2292_s29, %s2288_s10 }
  0x82   : > { %p87_p9 = scmp.eq.s32.totalorder %s86_s28, 0  ;;  %p97_p5 = scmp.eq.s32.totalorder %s2296_s30, 0 }
  0x83   : > { %p102_p7 = scmp.ne.s32.totalorder %s2288_s10, %s2284_s1  ;;  %p1850_p10 = scmp.lt.s32.totalorder %s2296_s30, 2 }
  0x84   : > { %s2562_s2 = scalar_select %p87_p9, %s2292_s29, %s89_s25  }
  0x85   : > { %p98_p13 = por %p97_p5, %p96_p12  ;;  %p2798_p0 = scmp.eq.s32.totalorder %s2444_s18, 0 }
  0x86   : > { %s493_s0 = sand.u32 1, %s2296_s30   ;;  %s495_s26 = sand.u32 1, %s2292_s29  }
  0x87   : > { %p2566_p1 = por %p2798_p0, %p102_p7  ;;  %s1598_s27 = sshll.u32 %s495_s26, 4 }
  0x88   : > { %s1642_s20 = sshll.u32 %s2296_s30, 8  ;;  %s497_s1 = scalar_lea.vmem [#allocation14], %s1598_s27 }
  0x89   : > { %s2799_s3 = scalar_select %p2566_p1, 1, 0 }
  0x8a   : > { %s2576_s17 = scalar_lea.hbm %s2767_s4, %s1642_s20  ;;  %s505_s21 = sshll.u32 %s497_s1, 4  ;;  %s506_s21 = int_to_ptr.vmem [resolvable:$true] %s505_s21 }
  0x8b   : > { %p2578_p11 = pnand %p1850_p10, %p98_p13  ;;  %s494_s28 = scalar_lea.sflag [#allocation10], %s493_s0 }
  0x8c   : > { %s2172_s5 = scalar_lea.hbm %s2576_s17, 256  ;;  %s2177_s20 = scalar_lea.hbm %s2767_s4, 512 }
  0x8d   : > { %p2173_p2 = scmp.ne.s32.totalorder %s2576_s17, %s2172_s5  ;;  %p2174_p3 = pneg %p2578_p11 }
  0x8e   : > { %p2178_p8 = scmp.lt.s32.totalorder %s2576_s17, %s2767_s4  ;;  %p2179_p12 = scmp.lt.s32.totalorder %s2177_s20, %s2172_s5 }
  0x8f   : > { %p2175_p4 = pnand %p2174_p3, %p2173_p2 }
  0x90   : > { %p2180_p9 = por %p2179_p12, %p2178_p8 }
  0x91   : > { %p2176_p6 = pneg %p2175_p4 }
  0x93   : > { %p2181_p5 = pnand %p2180_p9, %p2176_p6 }
  0x95   : > { %2184 = shalt.err (!%p2181_p5)
}
  0x96   : > { %s2185_s24 = scalar_lea.vmem %s506_s21, 256  ;;  %s2318_s0 = smov [#allocation14]  }
  0x97   : > { %p2186_p7 = scmp.ne.s32.totalorder %s506_s21, %s2185_s24  ;;  %s2190_s1 = sshll.u32 %s2318_s0, 4  ;;  %s2191_s1 = int_to_ptr.vmem [resolvable:$false] %s2190_s1 }
  0x98   : > { %s2192_s7 = scalar_lea.vmem %s2191_s1, 512  ;;  %p2193_p0 = scmp.lt.s32.totalorder %s506_s21, %s2191_s1 }
  0x99   : > { %p2188_p10 = pnand %p2186_p7, %p2174_p3  ;;  %p2194_p2 = scmp.lt.s32.totalorder %s2192_s7, %s2185_s24 }
  0x9b   : > { %p2189_p13 = pneg %p2188_p10  ;;  %p2195_p4 = por %p2194_p2, %p2193_p0 }
  0x9d   : > { %p2196_p1 = pnand %p2195_p4, %p2189_p13 }
  0x9f   : > { %2199 = shalt.err (!%p2196_p1)
}
  0xa0   : > { %1841 = dma.hbm_to_vmem [thread:$0]  (!%p2578_p11), %s2576_s17, 256, %s506_s21, %s494_s28  }
  0xa1   : > { %p2801_p6 = scmp.ne.s32.totalorder %s2791_s19, 0 }
  0xa2   : > { %p2802_p8 = scmp.eq.s32.totalorder (!%p2801_p6), %s2444_s18, 0 }
  0xa3   : > { %514 = sbr.rel (%p2801_p6) target bundleno = 1842 (0x732), region = 76 }
  0xa8   : > { %2251 = dma.done.wait (%p2802_p8), [#allocation10], 128   ;;  %p2803_p3 = pmov %p2802_p8 }
  0xaa   : > { %2253 = vsyncadd (%p2803_p3), [#allocation10], 4294967168  ;;  %p2804_p12 = pmov %p2803_p3 }
  0xab   : > { %p2805_p9 = pmov %p2803_p3 }
  0xac   : > { %2255 = dma.done.wait (%p2804_p12), [#allocation13], 128  }
  0xad   : > { %2257 = vsyncadd (%p2805_p9), [#allocation13], 4294967168  ;;  %s524_s5 = sand.u32 1, %s2444_s18   ;;  %s526_s7 = sand.u32 1, %s2288_s10  }
  0xae   : > { %s2608_s17 = sshll.u32 %s526_s7, 4  ;;  %s525_s19 = scalar_lea.sflag [#allocation10], %s524_s5 }
  0xaf   : > { %s528_s21 = scalar_lea.vmem [#allocation14], %s2608_s17  ;;  %p2806_p1 = scmp.ne.s32.totalorder %s2799_s3, 0 }
  0xb1   : > { %2259 = dma.done.wait (%p2806_p1), %s525_s19, 256  }
  0xb2   : > { %2261 = vsyncadd (%p2806_p1), %s525_s19, 4294967040  ;;  %p2807_p11 = pmov %p2803_p3 }
  0xb3   : > { %p2808_p5 = pmov %p2803_p3 }
  0xb4   : > { %2263 = dma.done.wait (%p2807_p11), [#allocation13], 512  }
  0xb5   : > { %2265 = vsyncadd (%p2808_p5), [#allocation13], 4294966784  ;;  %p2809_p7 = pmov %p2803_p3 }
  0xb6   : > { %p2810_p10 = pmov %p2803_p3 }
  0xb7   : > { %2267 = dma.done.wait (%p2809_p7), [#allocation17], 1024  }
  0xb8   : > { %2269 = vsyncadd (%p2810_p10), [#allocation17], 4294966272  ;;  %p2811_p13 = pmov %p2803_p3 }
  0xb9   : > { %p2812_p0 = pmov %p2803_p3 }
  0xba   : > { %2271 = dma.done.wait (%p2811_p13), [#allocation20], 1024  }
  0xbb   : > { %2273 = vsyncadd (%p2812_p0), [#allocation20], 4294966272  ;;  %p2813_p2 = pmov %p2812_p0 }
  0xbc   : > { %p2814_p4 = pmov %p2812_p0 }
  0xbd   : > { %2275 = dma.done.wait (%p2813_p2), [#allocation23], 512  }
  0xbe   : > { %2277 = vsyncadd (%p2814_p4), [#allocation23], 4294966784  ;;  %p2815_p6 = scmp.ne.s32.totalorder %s2444_s18, 0 }
  0xbf   : > { %s2321_s3 = smov (!%p2815_p6), 96   ;;  %s2322_s25 = smov (!%p2815_p6), 32  }
  0xc0   : > { %595 = sbr.rel (%p2815_p6) target bundleno = 632 (0x278), region = 116 }
  0xc5   : > { %v601_v0 = vld [vmem:[#allocation15 + $0x18] sm:$0xff]  ;;  %v2319_v1 = vmov 0.0   ;;  %v600_v2 = vld [vmem:[#allocation15 + $0x10] sm:$0xff]  ;;  %vm2320_vm0 = vmmov 0   ;;  %vm609_vm1 = vcmask 261120   ;;  %v599_v4 = vld [vmem:[#allocation15 + $0x8] sm:$0xff] }
  0xc6   : > { %1687 = vmatprep.subr.mxu0 %v2319_v1  ;;  %1695 = vmatprep.mubr.msk.f32.mxu0 %vm2320_vm0, %v2319_v1  ;;  %v596_v3 = vld [vmem:[#allocation9] sm:$0xff]  ;;  %v598_v5 = vld [vmem:[#allocation15] sm:$0xff]  ;;  %v693_v6 = vld [vmem:[#allocation16 + $0x18] sm:$0xff]  ;;  %vm782_vm2 = vcmask 523264   ;;  %vm788_vm3 = vcmask 1047808   ;;  %vm774_vm4 = vcmask 785408  }
  0xc7   : > { %1688 = vmatpush3.msra.mxu0 %v601_v0  ;;  %784 = vst.msk [vmem:[#allocation3] sm:$0xff] %vm609_vm1, %v596_v3  ;;  %1698 = vmatprep.subr.mxu1 %v2319_v1  ;;  %v692_v7 = vld [vmem:[#allocation16 + $0x10] sm:$0xff]  ;;  %v691_v8 = vld [vmem:[#allocation16 + $0x8] sm:$0xff]  ;;  %v690_v9 = vld [vmem:[#allocation16] sm:$0xff]  ;;  %vm780_vm5 = vcmask 1048320  }
  0xc8   : > { %1689 = vmatprep.subr.mxu0 %v2319_v1  ;;  %1706 = vmatprep.mubr.msk.f32.mxu1 %vm2320_vm0, %v2319_v1  ;;  %v597_v10 = vld [vmem:[#allocation12] sm:$0xff]  ;;  %v1612_v11 = vld [vmem:[%s2769_s6] ss:$0 sm:$0xff] }
  0xc9   : > { %1690 = vmatpush3.msra.mxu0 %v600_v2  ;;  %1699 = vmatpush3.msra.mxu1 %v693_v6  ;;  %v1615_v22 = vld [vmem:[%s2771_s8] ss:$0 sm:$0xff] }
  0xca   : > { %1691 = vmatprep.subr.mxu0 %v2319_v1  ;;  %1700 = vmatprep.subr.mxu1 %v2319_v1 }
  0xcb   : > { %1692 = vmatpush3.msra.mxu0 %v599_v4  ;;  %1701 = vmatpush3.msra.mxu1 %v692_v7 }
  0xcc   : > { %1693 = vmatprep.subr.mxu0 %v2319_v1  ;;  %1702 = vmatprep.subr.mxu1 %v2319_v1 }
  0xcd   : > { %1694 = vmatpush3.msra.mxu0 %v598_v5  ;;  %1703 = vmatpush3.msra.mxu1 %v691_v8 }
  0xce   : > { %1696 = vmatmul.mubr.msk.f32.vlgmr.msra.gmra.mxu0 %vm609_vm1, %v596_v3  ;;  %1704 = vmatprep.subr.mxu1 %v2319_v1 }
  0xcf   : > { %1705 = vmatpush3.msra.mxu1 %v690_v9  ;;  %777 = vrot.lane.b32.xlu0 %v597_v10, %s2321_s3 }
  0xd3   : > { %785 = vrot.lane.b32.xlu0 %v597_v10, %s2322_s25 }
 0x141   : > { %v778_v18 = vpop.permute.xlu0 %777 }
 0x142   : > { %783 = vst.msk [vmem:[#allocation2 + $0x8] sm:$0xff] %vm782_vm2, %v778_v18 }
 0x145   : > { %v786_v21 = vpop.permute.xlu0 %785 }
 0x146   : > { %789 = vst.msk [vmem:[#allocation3] sm:$0xff] %vm788_vm3, %v786_v21 }
 0x18e   : > { %v679_v12 = vpop.f32.mrf.mxu0 }
 0x18f   : > { %v680_v13 = vadd.f32 %v1612_v11, %v679_v12 }
 0x190   : > { %v1697_v14 = vpop.f32.mrf.mxu0 }
 0x191   : > { %v1614_v15 = vmul.f32 -1.442695, %v680_v13 }
 0x193   : > { %1934 = vpow2.f32 %v1614_v15 }
 0x1a0   : > { %v1935_v16 = vpop.eup %1934 }
 0x1a1   : > { %v686_v17 = vadd.f32 1.0, %v1935_v16 }
 0x1a3   : > { %1936 = vrcp.f32 %v686_v17 }
 0x1b0   : > { %v1937_v19 = vpop.eup %1936 }
 0x1b1   : > { %v689_v20 = vmul.f32 %v1937_v19, %v680_v13 }
 0x1b3   : > { %1707 = vmatmul.mubr.msk.f32.vlgmr.msra.gmra.mxu1 %vm609_vm1, %v689_v20 }
 0x273   : > { %v770_v23 = vpop.f32.mrf.mxu1 }
 0x274   : > { %v771_v24 = vadd.f32 %v1615_v22, %v770_v23 }
 0x275   : > { %v1708_v25 = vpop.f32.mrf.mxu1 }
 0x276   : > { %775 = vst.msk [vmem:[#allocation2] sm:$0xff] %vm774_vm4, %v771_v24 }
 0x277   : > { %781 = vst.msk [vmem:[#allocation2] sm:$0xff] %vm780_vm5, %v778_v18 }
 0x278 PF: > { %s1617_s23 = sshll.u32 %s2444_s18, 3  ;;  %s2298_s27 = smov 0  }
 0x279 LB: >> { %s797_s24 = sadd.s32 %s2300_s27, %s1617_s23  ;;  %s816_s1 = sshra.s32 %s2300_s27, 3  ;;  %v812_v26 = vlaneseq  ;;  %s2300_s27 = sphi %s2298_s27, %s796_s27  }
 0x27a   : >> { %s798_s0 = sld [smem:[#allocation8 + %s797_s24]]  ;;  %s819_s5 = sand.u32 7, %s2300_s27 }
 0x27b   : >> { %s1646_s7 = sshll.u32 %s816_s1, 4  ;;  %vm814_vm6 = vcmp.lt.s32.totalorder %v812_v26, 192  ;;  %s796_s27 = sadd.s32 1, %s2300_s27  }
 0x27c   : >> { %s822_s19 = sadd.s32 %s1646_s7, %s819_s5  ;;  %p793_p12 = scmp.ge.s32.totalorder %s796_s27, 8  }
 0x27d   : >> { %s823_s20 = scalar_lea.vmem [#allocation4], %s822_s19  ;;  %s2323_s24 = smov (%p793_p12), 64   ;;  %v829_v30 = vld [vmem:[%s528_s21 + $0x8] sm:$0xff] (%p793_p12)  ;;  %v828_v38 = vld [vmem:[%s528_s21] sm:$0xff] (%p793_p12)  ;;  %vm863_vm7 = vcmask (%p793_p12), 261120   ;;  %vm865_vm8 = vcmask (%p793_p12), 523264  }
 0x27e   : > { %s2324_s1 = smov (%p793_p12), 96   ;;  %vm867_vm9 = vcmask (%p793_p12), 785408   ;;  %s2302_s17 = smov (%p793_p12), 0  }
 0x280   : >> { %p799_p8 = scmp.gt.s32.totalorder %s798_s0, 0  ;;  %p1618_p3 = scmp.lt.s32.totalorder %s798_s0, 7 }
 0x282   : >> { %s2822_s0 = smov (!%p799_p8, %s798_s0), 0 }
 0x283   : >> { %s2824_s0 = smov (!%p1618_p3, %s2822_s0), 7 }
 0x284   : >> { %s803_s3 = sshra.s32 %s2824_s0, 3  ;;  %s806_s25 = sand.u32 7, %s2824_s0 }
 0x285   : >> { %s1645_s28 = sshll.u32 %s803_s3, 4  ;;  %795 = sbr.rel (!%p793_p12) target bundleno = 633 (0x279), region = 174 }
 0x286   : >> { %s809_s30 = sadd.s32 %s1645_s28, %s806_s25  ;;  %s2325_s0 = smov (%p793_p12), 32  }
 0x287   : >> { %s810_s26 = scalar_lea.vmem [#allocation2], %s809_s30 }
 0x288   : >> { %v811_v27 = vld [vmem:[%s810_s26] ss:$8 sm:$0x3] }
 0x289   : >> { %824 = vst.msk [vmem:[%s823_s20] ss:$8 sm:$0x3] %vm814_vm6, %v811_v27 }
 0x290   : > { %v826_v28 = vld [vmem:[#allocation4] sm:$0xff]  ;;  %v827_v29 = vld [vmem:[#allocation4 + $0x8] sm:$0xff] }
 0x291   : > { %832 = vrot.lane.b32.xlu0 %v826_v28, %s2323_s24  ;;  %854 = vrot.lane.b32.xlu1 %v827_v29, %s2324_s1  ;;  %v830_v39 = vmul.f32 %v828_v38, %v826_v28 }
 0x295   : > { %836 = vrot.lane.b32.xlu0 %v826_v28, %s2325_s0 }
 0x303   : > { %v833_v31 = vpop.permute.xlu0 %832  ;;  %v855_v36 = vpop.permute.xlu1 %854 }
 0x304   : > { %v835_v32 = vmul.f32 %v833_v31, %v829_v30  ;;  %v852_v44 = vmul.f32 %v833_v31, %v828_v38 }
 0x306   : > { %v846_v33 = vmul.f32 %v835_v32, %v827_v29  ;;  %v857_v37 = vmul.f32 %v855_v36, %v835_v32 }
 0x307   : > { %v837_v34 = vpop.permute.xlu0 %836 }
 0x308   : > { %v839_v35 = vmul.f32 %v837_v34, %v835_v32  ;;  %848 = vrot.lane.b32.xlu0 %v846_v33, %s2323_s24  ;;  %v845_v43 = vmul.f32 %v837_v34, %v828_v38 }
 0x30a   : > { %841 = vrot.lane.b32.xlu1 %v839_v35, %s2325_s0 }
 0x30e   : > { %859 = vrot.lane.b32.xlu1 %v857_v37, %s2324_s1 }
 0x37a   : > { %v849_v41 = vpop.permute.xlu0 %848 }
 0x37b   : > { %v851_v46 = vadd.f32 %v849_v41, %v845_v43 }
 0x37c   : > { %v842_v40 = vpop.permute.xlu1 %841 }
 0x37d   : > { %v844_v42 = vadd.f32 %v842_v40, %v830_v39 }
 0x37f   : > { %v864_v45 = vsel %vm863_vm7, %v830_v39, %v844_v42 }
 0x380   : > { %v860_v47 = vpop.permute.xlu1 %859  ;;  %v866_v49 = vsel %vm865_vm8, %v864_v45, %v851_v46 }
 0x381   : > { %v862_v48 = vadd.f32 %v860_v47, %v852_v44 }
 0x383   : > { %v868_v50 = vsel %vm867_vm9, %v866_v49, %v862_v48 }
 0x384   : > { %869 = vst [vmem:[#allocation5] sm:$0xff] %v868_v50 }
 0x385 LB: >> { %s876_s21 = sadd.s32 %s2304_s17, %s1617_s23  ;;  %s2304_s17 = sphi %s2302_s17, %s875_s17  }
 0x386   : >> { %s877_s27 = sld [smem:[#allocation7 + %s876_s21]] }
 0x38c   : >> { %p878_p9 = scmp.ge.s32.totalorder %s877_s27, 0  ;;  %p879_p1 = scmp.lt.s32.totalorder %s877_s27, 8 }
 0x38e   : >> { %p880_p11 = pnand %p879_p1, %p878_p9 }
 0x38f   : >> { %s884_s5 = scalar_lea.vmem (!%p880_p11), [#allocation3], %s877_s27  ;;  %s886_s7 = scalar_lea.vmem (!%p880_p11), [#allocation5], %s2304_s17 }
 0x390   : >> { %883 = sbr.rel (%p880_p11) target bundleno = 922 (0x39a), region = 134 }
 0x395   : >> { %v885_v51 = vld [vmem:[%s884_s5] sm:$0x1] }
 0x396   : >> { %v887_v52 = vld [vmem:[%s886_s7] sm:$0x1] }
 0x397   : >> { %v888_v53 = vadd.f32 %v887_v52, %v885_v51 }
 0x399   : >> { %889 = vst [vmem:[%s884_s5] sm:$0x1] %v888_v53 }
 0x39a PF: >> { %s875_s17 = sadd.s32 1, %s2304_s17  }
 0x39b   : >> { %p872_p5 = scmp.ge.s32.totalorder %s875_s17, 8  }
 0x39c   : > { %p1627_p7 = scmp.ne.s32.totalorder (%p872_p5), %s2444_s18, 1 }
 0x39d   : > { %874 = sbr.rel (!%p872_p5) target bundleno = 901 (0x385), region = 185 }
 0x3a2   : > { %893 = sbr.rel (%p1627_p7) target bundleno = 1827 (0x723), region = 138  ;;  %s2326_s19 = smov (!%p1627_p7), 96  }
 0x3a3   : > { %s2328_s3 = smov (!%p1627_p7), 32   ;;  %s2329_s23 = smov (!%p1627_p7), 64  }
 0x3a4   : > { %s2816_s30 = sld [smem:[#allocation39_spill]] (!%p1627_p7) }
 0x3a7   : > { %v2655_v54 = vld [vmem:[#allocation3] sm:$0xff]  ;;  %v898_v55 = vld [vmem:[#allocation18 + $0x18] sm:$0xff]  ;;  %v2327_v56 = vmov 0.0   ;;  %v896_v58 = vld [vmem:[#allocation18 + $0x8] sm:$0xff]  ;;  %vm2330_vm10 = vmmov 0  }
 0x3a8   : > { %907 = vrot.lane.b32.xlu0 %v2655_v54, %s2326_s19  ;;  %1709 = vmatprep.subr.mxu0 %v2327_v56  ;;  %v897_v57 = vld [vmem:[#allocation18 + $0x10] sm:$0xff]  ;;  %v895_v59 = vld [vmem:[#allocation18] sm:$0xff]  ;;  %v1162_v63 = vld [vmem:[#allocation19 + $0x18] sm:$0xff] }
 0x3a9   : > { %1055 = vrot.lane.b32.xlu1 %v2655_v54, %s2328_s3  ;;  %1710 = vmatpush3.msra.mxu0 %v898_v55  ;;  %v1166_v0 = vld [vmem:[#allocation21 + $0x18] sm:$0xff]  ;;  %v1161_v1 = vld [vmem:[#allocation19 + $0x10] sm:$0xff]  ;;  %v1160_v3 = vld [vmem:[#allocation19 + $0x8] sm:$0xff] }
 0x3aa   : > { %1711 = vmatprep.subr.mxu0 %v2327_v56  ;;  %1720 = vmatprep.subr.mxu1 %v2327_v56  ;;  %v1165_v2 = vld [vmem:[#allocation21 + $0x10] sm:$0xff]  ;;  %v1164_v4 = vld [vmem:[#allocation21 + $0x8] sm:$0xff]  ;;  %v1159_v5 = vld [vmem:[#allocation19] sm:$0xff] }
 0x3ab   : > { %1712 = vmatpush3.msra.mxu0 %v897_v57  ;;  %1721 = vmatpush3.msra.mxu1 %v898_v55  ;;  %v1163_v6 = vld [vmem:[#allocation21] sm:$0xff]  ;;  %v1330_v38 = vld [vmem:[#allocation22 + $0x18] sm:$0xff]  ;;  %v1329_v39 = vld [vmem:[#allocation22 + $0x10] sm:$0xff] }
 0x3ac   : > { %981 = vrot.lane.b32.xlu0 %v2655_v54, %s2329_s23  ;;  %1713 = vmatprep.subr.mxu0 %v2327_v56  ;;  %v1628_v7 = vld [vmem:[%s2816_s30] ss:$0 sm:$0xff]  ;;  %v1328_v40 = vld [vmem:[#allocation22 + $0x8] sm:$0xff] }
 0x3ad   : > { %1714 = vmatpush3.msra.mxu0 %v896_v58  ;;  %1722 = vmatprep.subr.mxu1 %v2327_v56  ;;  %v1327_v41 = vld [vmem:[#allocation22] sm:$0xff] }
 0x3ae   : > { %1715 = vmatprep.subr.mxu0 %v2327_v56  ;;  %1717 = vmatprep.mubr.msk.f32.mxu0 %vm2330_vm10, %v2327_v56  ;;  %v1634_v43 = vld [vmem:[%s2776_s13] ss:$0 sm:$0xff] }
 0x3af   : > { %1716 = vmatpush3.msra.mxu0 %v895_v59  ;;  %1723 = vmatpush3.msra.mxu1 %v897_v57  ;;  %v1636_v52 = vld [vmem:[%s2778_s15] ss:$0 sm:$0xff] }
 0x3b0   : > { %1731 = vmatprep.subr.mxu0 %v2327_v56  ;;  %1724 = vmatprep.subr.mxu1 %v2327_v56 }
 0x3b1   : > { %1725 = vmatpush3.msra.mxu1 %v896_v58  ;;  %1728 = vmatprep.mubr.msk.f32.mxu1 %vm2330_vm10, %v2327_v56 }
 0x3b2   : > { %1726 = vmatprep.subr.mxu1 %v2327_v56 }
 0x3b3   : > { %1727 = vmatpush3.msra.mxu1 %v895_v59 }
 0x3b4   : > { %1742 = vmatprep.subr.mxu1 %v2327_v56 }
 0x41a   : > { %v908_v60 = vpop.permute.xlu0 %907 }
 0x41b   : > { %1718 = vmatmul.mubr.msk.f32.vlgmr.msra.gmra.mxu0 %vm863_vm7, %v908_v60  ;;  %v1056_v62 = vpop.permute.xlu1 %1055 }
 0x41c   : > { %1732 = vmatpush3.msra.mxu0 %v898_v55  ;;  %1739 = vmatprep.mubr.msk.f32.mxu0 %vm2330_vm10, %v2327_v56 }
 0x41d   : > { %1733 = vmatprep.subr.mxu0 %v2327_v56 }
 0x41e   : > { %1734 = vmatpush3.msra.mxu0 %v897_v57  ;;  %v982_v61 = vpop.permute.xlu0 %981 }
 0x41f   : > { %1735 = vmatprep.subr.mxu0 %v2327_v56  ;;  %1729 = vmatmul.mubr.msk.f32.vlgmr.msra.gmra.mxu1 %vm863_vm7, %v982_v61 }
 0x420   : > { %1736 = vmatpush3.msra.mxu0 %v896_v58  ;;  %1750 = vmatprep.mubr.msk.f32.mxu1 %vm2330_vm10, %v2327_v56 }
 0x421   : > { %1737 = vmatprep.subr.mxu0 %v2327_v56  ;;  %1743 = vmatpush3.msra.mxu1 %v1166_v0 }
 0x422   : > { %1738 = vmatpush3.msra.mxu0 %v895_v59  ;;  %1744 = vmatprep.subr.mxu1 %v2327_v56 }
 0x423   : > { %1740 = vmatmul.mubr.msk.f32.vlgmr.msra.gmra.mxu0 %vm863_vm7, %v1056_v62  ;;  %1753 = vmatprep.subr.mxu0 %v2327_v56 }
 0x424   : > { %1761 = vmatprep.mubr.msk.f32.mxu0 %vm2330_vm10, %v2327_v56  ;;  %1754 = vmatpush3.msra.mxu0 %v1162_v63 }
 0x425   : > { %1755 = vmatprep.subr.mxu0 %v2327_v56  ;;  %1745 = vmatpush3.msra.mxu1 %v1165_v2 }
 0x426   : > { %1756 = vmatpush3.msra.mxu0 %v1161_v1  ;;  %1746 = vmatprep.subr.mxu1 %v2327_v56 }
 0x427   : > { %1757 = vmatprep.subr.mxu0 %v2327_v56  ;;  %1747 = vmatpush3.msra.mxu1 %v1164_v4 }
 0x428   : > { %1758 = vmatpush3.msra.mxu0 %v1160_v3  ;;  %1748 = vmatprep.subr.mxu1 %v2327_v56 }
 0x429   : > { %1759 = vmatprep.subr.mxu0 %v2327_v56  ;;  %1749 = vmatpush3.msra.mxu1 %v1163_v6 }
 0x42a   : > { %1760 = vmatpush3.msra.mxu0 %v1159_v5  ;;  %1764 = vmatprep.subr.mxu1 %v2327_v56 }
 0x42b   : > { %1762 = vmatmul.mubr.msk.f32.vlgmr.msra.gmra.mxu0 %vm863_vm7, %v2655_v54 }
 0x4db   : > { %v977_v8 = vpop.f32.mrf.mxu0 }
 0x4dc   : > { %v2702_v9 = vadd.f32 %v1628_v7, %v977_v8 }
 0x4dd   : > { %v1719_v10 = vpop.f32.mrf.mxu0 }
 0x4de   : > { %1143 = vrot.lane.b32.xlu1 %v2702_v9, %s2326_s19  ;;  %v1129_v14 = vmul.f32 %v2702_v9, %v2702_v9 }
 0x4df   : > { %v1051_v11 = vpop.f32.mrf.mxu1 }
 0x4e0   : > { %v2706_v12 = vadd.f32 %v1628_v7, %v1051_v11 }
 0x4e1   : > { %v1730_v13 = vpop.f32.mrf.mxu1 }
 0x4e2   : > { %v1130_v15 = vmul.f32 %v2706_v12, %v2706_v12  ;;  %1148 = vrot.lane.b32.xlu0 %v2706_v12, %s2326_s19 }
 0x4e3   : > { %v1125_v16 = vpop.f32.mrf.mxu0 }
 0x4e4   : > { %v1131_v17 = vadd.f32 %v1130_v15, %v1129_v14  ;;  %v1126_v18 = vadd.f32 %v1628_v7, %v1125_v16 }
 0x4e5   : > { %v1741_v19 = vpop.f32.mrf.mxu0 }
 0x4e6   : > { %v1132_v20 = vmul.f32 %v1126_v18, %v1126_v18  ;;  %1154 = vrot.lane.b32.xlu1 %v1126_v18, %s2326_s19 }
 0x4e8   : > { %v1133_v21 = vadd.f32 %v1132_v20, %v1131_v17 }
 0x4ea   : > { %v1134_v22 = vadd.f32 1e-08, %v1133_v21 }
 0x4eb   : > { %v1308_v28 = vpop.f32.mrf.mxu0 }
 0x4ec   : > { %1938 = vrsqrt.f32 %v1134_v22  ;;  %vm1137_vm11 = vcmp.eq.f32.partialorder %v1134_v22, inf  ;;  %v1140_v25 = vand.u32 2147483648, %v1134_v22  ;;  %vm1139_vm12 = vcmp.eq.f32.partialorder %v1134_v22, 0.0 }
 0x4ed   : > { %v1763_v29 = vpop.f32.mrf.mxu0 }
 0x4f9   : > { %v1939_v23 = vpop.eup %1938 }
 0x4fa   : > { %v1136_v24 = vmul.f32 %v1939_v23, %v1134_v22 }
 0x4fc   : > { %v1138_v26 = vsel %vm1137_vm11, %v1134_v22, %v1136_v24 }
 0x4fd   : > { %v1141_v27 = vsel %vm1139_vm12, %v1140_v25, %v1138_v26 }
 0x4fe   : > { %1751 = vmatmul.mubr.msk.f32.vlgmr.msra.gmra.mxu1 %vm863_vm7, %v1141_v27 }
 0x4ff   : > { %1772 = vmatprep.mubr.msk.f32.mxu1 %vm2330_vm10, %v2327_v56  ;;  %1765 = vmatpush3.msra.mxu1 %v1330_v38 }
 0x500   : > { %1766 = vmatprep.subr.mxu1 %v2327_v56 }
 0x501   : > { %1767 = vmatpush3.msra.mxu1 %v1329_v39 }
 0x502   : > { %1768 = vmatprep.subr.mxu1 %v2327_v56 }
 0x503   : > { %1769 = vmatpush3.msra.mxu1 %v1328_v40 }
 0x504   : > { %1770 = vmatprep.subr.mxu1 %v2327_v56 }
 0x505   : > { %1771 = vmatpush3.msra.mxu1 %v1327_v41 }
 0x550   : > { %v1144_v30 = vpop.permute.xlu1 %1143 }
 0x551   : > { %v1146_v32 = vmul.f32 %v1144_v30, %v2702_v9 }
 0x554   : > { %v1149_v31 = vpop.permute.xlu0 %1148 }
 0x555   : > { %v1151_v33 = vmul.f32 %v1149_v31, %v2706_v12 }
 0x557   : > { %v1152_v34 = vadd.f32 %v1151_v33, %v1146_v32 }
 0x558   : > { %v1155_v35 = vpop.permute.xlu1 %1154 }
 0x559   : > { %v1157_v36 = vmul.f32 %v1155_v35, %v1126_v18 }
 0x55b   : > { %v1158_v37 = vadd.f32 %v1157_v36, %v1152_v34 }
 0x55d   : > { %1412 = vrot.lane.b32.xlu0 %v1158_v37, %s2329_s23 }
 0x5be   : > { %v1236_v42 = vpop.f32.mrf.mxu1 }
 0x5bf   : > { %v1309_v44 = vadd.f32 %v1308_v28, %v1236_v42 }
 0x5c0   : > { %v1752_v45 = vpop.f32.mrf.mxu1 }
 0x5c1   : > { %v1319_v46 = vadd.f32 %v1634_v43, %v1309_v44 }
 0x5c3   : > { %v1635_v47 = vmul.f32 -1.442695, %v1319_v46 }
 0x5c5   : > { %1940 = vpow2.f32 %v1635_v47 }
 0x5cf   : > { %v1413_v55 = vpop.permute.xlu0 %1412 }
 0x5d2   : > { %v1941_v48 = vpop.eup %1940 }
 0x5d3   : > { %v1323_v49 = vadd.f32 1.0, %v1941_v48 }
 0x5d5   : > { %1942 = vrcp.f32 %v1323_v49 }
 0x5e2   : > { %v1943_v50 = vpop.eup %1942 }
 0x5e3   : > { %v1326_v51 = vmul.f32 %v1943_v50, %v1319_v46 }
 0x5e5   : > { %1773 = vmatmul.mubr.msk.f32.vlgmr.msra.gmra.mxu1 %vm863_vm7, %v1326_v51 }
 0x6a5   : > { %v1407_v53 = vpop.f32.mrf.mxu1 }
 0x6a6   : > { %v1408_v54 = vadd.f32 %v1636_v52, %v1407_v53 }
 0x6a7   : > { %v1774_v56 = vpop.f32.mrf.mxu1 }
 0x6a8   : > { %v1422_v57 = vmul.f32 %v1408_v54, %v2706_v12  ;;  %v1415_v58 = vmul.f32 %v1413_v55, %v1408_v54  ;;  %v1423_v59 = vmul.f32 %v1408_v54, %v1126_v18  ;;  %v1421_v62 = vmul.f32 %v1408_v54, %v2702_v9 }
 0x6aa   : > { %1425 = vrot.lane.b32.xlu0 %v1422_v57, %s2328_s3  ;;  %1417 = vrot.lane.b32.xlu1 %v1415_v58, %s2329_s23 }
 0x6ae   : > { %1429 = vrot.lane.b32.xlu1 %v1423_v59, %s2329_s23 }
 0x71c   : > { %v1418_v60 = vpop.permute.xlu1 %1417  ;;  %v1426_v63 = vpop.permute.xlu0 %1425 }
 0x71d   : > { %v1420_v61 = vadd.f32 %v1418_v60, %v1408_v54 }
 0x71f   : > { %v1432_v0 = vsel %vm863_vm7, %v1420_v61, %v1421_v62 }
 0x720   : > { %v1433_v1 = vsel %vm865_vm8, %v1432_v0, %v1426_v63  ;;  %v1430_v2 = vpop.permute.xlu1 %1429 }
 0x721   : > { %v1434_v3 = vsel %vm867_vm9, %v1433_v1, %v1430_v2 }
 0x722   : > { %1435 = vst [vmem:[#allocation24] sm:$0xff] %v1434_v3 }
 0x723 PF: > { %p1859_p10 = scmp.eq.s32.totalorder %s2444_s18, 1  ;;  %s2331_s0 = smov [#allocation24]  }
 0x724   : > { %s1443_s17 = sshll.u32 %s2331_s0, 4  ;;  %s1444_s17 = int_to_ptr.vmem [resolvable:$true] %s1443_s17 }
 0x725   : > { %s2200_s21 = scalar_lea.vmem %s1444_s17, 128  ;;  %p2207_p4 = scmp.lt.s32.totalorder %s1444_s17, %s1444_s17 }
 0x726   : > { %p2201_p13 = scmp.ne.s32.totalorder %s1444_s17, %s2200_s21  ;;  %p2208_p6 = scmp.lt.s32.totalorder %s2200_s21, %s2200_s21 }
 0x728   : > { %p2202_p0 = pnand %p2201_p13, %p1859_p10  ;;  %p2209_p8 = por %p2208_p6, %p2207_p4 }
 0x72a   : > { %p2203_p2 = pneg %p2202_p0 }
 0x72c   : > { %p2210_p3 = pnand %p2209_p8, %p2203_p2 }
 0x72e   : > { %2213 = shalt.err (!%p2210_p3)
}
 0x72f   : > { %1810 = dma.vmem_to_hbm [thread:$0]  (%p1859_p10), %s1444_s17, 128, %s2779_s16, [#allocation11]  }
 0x730   : > { %2279 = dma.done.wait (%p1859_p10), [#allocation11], 128  }
 0x731   : > { %2281 = vsyncadd (%p1859_p10), [#allocation11], 4294967168 }
 0x732 PF: > { %p37_p12 = scmp.ge.s32.totalorder %s2550_s22, 4   ;;  %s2817_s1 = smov %s2288_s10 }
 0x733   : > { %s2818_s10 = smov %s2292_s29  ;;  %s2819_s29 = smov %s2562_s2 }
 0x734   : > { %s2820_s30 = smov %s2550_s22  ;;  %39 = sbr.rel (!%p37_p12) target bundleno = 27 (0x1b), region = 196 }
 0x739   :  { %1456 = vsyncpa [#allocation10], 1 }
 0x73a   :  { %1458 = vsyncpa [#allocation10 + $0x1], 1 }
 0x73b   :  { %1459 = vsyncpa [#allocation13], 1 }
 0x73c   :  { %1460 = vsyncpa [#allocation17], 1 }
 0x73d   :  { %1461 = vsyncpa [#allocation20], 1 }
 0x73e   :  { %1462 = vsyncpa [#allocation23], 1 }
 0x73f   :  { %1463 = vsyncpa [#allocation11], 1 }
 0x740   :  { %1465 = vsyncpa [#allocation11 + $0x1], 1 }

</bundles_post_ra>
